<compile_context>
chip_gen: v7x
topology: tpu7x:2x2x1
jax: 0.10.0
libtpu: 0.0.40
codegen_flags: <defaults>
</compile_context>

<pallas_src>
import functools

import jax
import jax.numpy as jnp
from jax.experimental import pallas as pl
from jax.experimental.pallas import tpu as pltpu


# ----------------------------------------------------------------------------
# Fused kernel factory
# ----------------------------------------------------------------------------
def make_fused_fcnts_kernel(B, L, convs, compute_dtype):
    (K1, P1), (K2, P2), (K3, P3) = convs
    M = B * L

    def zero_pad_rows(pad_ref, P, K):
        # Only the top P rows and bottom (K-1-P) rows are ever read as padding.
        C = pad_ref.shape[2]
        if P > 0:
            pad_ref[:, pl.ds(0, P), :] = jnp.zeros((B, P, C), pad_ref.dtype)
        tail = K - 1 - P
        if tail > 0:
            pad_ref[:, pl.ds(P + L, tail), :] = jnp.zeros((B, tail, C), pad_ref.dtype)

    def conv_bn_relu(pad_ref, a_prev, w_ref, b_ref, K, P):
        # a_prev: (M, Cin) f32.  Store interior at row offset P (per sample),
        # build im2col cols as a lane concat of K shifted windows, one MXU
        # matmul, then the folded-BN epilogue (add + ReLU) in f32.
        Cin = pad_ref.shape[2]
        zero_pad_rows(pad_ref, P, K)
        pad_ref[:, pl.ds(P, L), :] = a_prev.reshape(B, L, Cin).astype(compute_dtype)
        cols = jnp.concatenate(
            [pad_ref[:, pl.ds(k, L), :] for k in range(K)], axis=2
        ).reshape(M, K * Cin)
        acc = jnp.dot(cols, w_ref[...], preferred_element_type=jnp.float32)
        return jnp.maximum(acc + b_ref[...], 0.0)

    def kernel(xc_ref, w1_ref, b1_ref, w2_ref, b2_ref, w3_ref, b3_ref,
               wl_ref, bl_ref, o_ref, p2_ref, p3_ref):
        # ---- layer 1: im2col cols were built in the wrapper -> single matmul
        a = jnp.dot(xc_ref[...], w1_ref[...], preferred_element_type=jnp.float32)
        a = jnp.maximum(a + b1_ref[...], 0.0)                       # (M, F) f32

        # ---- layers 2 & 3
        a = conv_bn_relu(p2_ref, a, w2_ref, b2_ref, K2, P2)         # (M, 2F)
        a = conv_bn_relu(p3_ref, a, w3_ref, b3_ref, K3, P3)         # (M, F)

        # ---- GAP (1/L folded into wl) + linear, lane-dense output block
        F_out = a.shape[1]
        pooled = jnp.sum(a.reshape(B, L, F_out), axis=1)            # (B, F) f32
        logits = jnp.dot(pooled.astype(compute_dtype), wl_ref[...],
                         preferred_element_type=jnp.float32) + bl_ref[...]
        o_ref[...] = logits.astype(o_ref.dtype)                     # (B, nbp)

    return kernel


# ----------------------------------------------------------------------------
# Wrapper helpers
# ----------------------------------------------------------------------------
def _fold_conv_bn(w_t, b_conv, gamma, beta, mean, var, eps, compute_dtype):
    """PyTorch Conv1d weight (Cout, Cin, K) -> im2col matrix (K*Cin, Cout) with the
    eval-mode BN scale folded into the columns; conv bias folded into the BN bias."""
    Cout, Cin, K = w_t.shape
    s = (gamma / jnp.sqrt(var + eps)).astype(jnp.float32)           # (Cout,)
    w = jnp.transpose(w_t, (2, 1, 0)).reshape(K * Cin, Cout).astype(jnp.float32)
    w = (w * s[None, :]).astype(compute_dtype)
    b = ((b_conv - mean) * s + beta).reshape(1, Cout).astype(jnp.float32)
    return w, b, K


def _pick_batch_tile(N, L, target_rows=1024, max_tile=128):
    """Pick B | N with B % 8 == 0 (or B == N), targeting B*L ~ target_rows."""
    cands = [d for d in range(1, min(N, max_tile) + 1)
             if N % d == 0 and (d % 8 == 0 or d == N)]
    if not cands:
        return N
    target = max(1, target_rows // max(L, 1))
    good = [d for d in cands if d <= 2 * target]
    return max(good) if good else min(cands)


def fcnts_forward(x_ncl, p, *, compute_dtype=jnp.bfloat16, eps=1e-5):
    """x_ncl: (N, Cin, L), PyTorch layout.  Returns (N, nb_classes) f32 logits.

    compute_dtype: MXU operand / stored-activation dtype.  bf16 gives the native
    MXU rate on v5e/v6e/v7x (accumulation & epilogues stay f32, expect ~1e-2 abs
    error vs f32); pass jnp.float32 for bit-tight validation.
    """
    N, Cin, L = x_ncl.shape
    F = p['w1'].shape[0]
    F2 = p['w2'].shape[0]
    nb = p['wl'].shape[0]
    K1, K2, K3 = p['w1'].shape[2], p['w2'].shape[2], p['w3'].shape[2]
    P1, P2, P3 = 4, 2, 1                                   # torch paddings

    # Geometry of the original module: layer 1 produces L+1 and slices [:-1];
    # layers 2/3 are length-preserving.
    if 2 * P1 - K1 + 1 != 1:
        raise ValueError(f"layer1 geometry K={K1}, pad={P1} unsupported")
    if 2 * P2 - K2 + 1 != 0 or 2 * P3 - K3 + 1 != 0:
        raise ValueError("layers 2/3 must be length-preserving")

    # --- weight prep (done once, outside the kernel) -------------------------
    w1, b1, _ = _fold_conv_bn(p['w1'], p['b1'], p['g1'], p['be1'], p['m1'], p['v1'],
                              eps, compute_dtype)
    w2, b2, _ = _fold_conv_bn(p['w2'], p['b2'], p['g2'], p['be2'], p['m2'], p['v2'],
                              eps, compute_dtype)
    w3, b3, _ = _fold_conv_bn(p['w3'], p['b3'], p['g3'], p['be3'], p['m3'], p['v3'],
                              eps, compute_dtype)

    nbp = 128 * pl.cdiv(nb, 128)                           # lane-dense output width
    wl = jnp.zeros((F, nbp), jnp.float32).at[:, :nb].set(
        jnp.transpose(p['wl']).astype(jnp.float32) / float(L))       # 1/L folded in
    wl = wl.astype(compute_dtype)
    bl = jnp.zeros((1, nbp), jnp.float32).at[:, :nb].set(
        p['bl'].reshape(1, nb).astype(jnp.float32))

    # --- layer-1 im2col built in the wrapper (layout plumbing, Cin is tiny) --
    x_pad = jnp.pad(x_ncl, ((0, 0), (0, 0), (P1, K1 - 1 - P1)))      # (N, Cin, L+K1-1)
    taps = [x_pad[:, :, k:k + L] for k in range(K1)]                 # each (N, Cin, L)
    cols1 = jnp.stack(taps, axis=1)                                  # (N, K1, Cin, L)
    cols1 = jnp.transpose(cols1, (0, 3, 1, 2)).reshape(N * L, K1 * Cin)
    cols1 = cols1.astype(compute_dtype)

    # --- launch ---------------------------------------------------------------
    B = _pick_batch_tile(N, L)
    kernel = make_fused_fcnts_kernel(
        B, L, ((K1, P1), (K2, P2), (K3, P3)), compute_dtype)
    const = lambda i: (0, 0)                               # resident weights/biases

    out = pl.pallas_call(
        kernel,
        out_shape=jax.ShapeDtypeStruct((N, nbp), jnp.float32),
        grid=(N // B,),                                    # one batch tile per step
        in_specs=[
            pl.BlockSpec((B * L, K1 * Cin), lambda i: (i, 0)),   # layer-1 im2col
            pl.BlockSpec(w1.shape, const), pl.BlockSpec(b1.shape, const),
            pl.BlockSpec(w2.shape, const), pl.BlockSpec(b2.shape, const),
            pl.BlockSpec(w3.shape, const), pl.BlockSpec(b3.shape, const),
            pl.BlockSpec(wl.shape, const), pl.BlockSpec(bl.shape, const),
        ],
        out_specs=pl.BlockSpec((B, nbp), lambda i: (i, 0)),
        scratch_shapes=[
            pltpu.VMEM((B, L + K2 - 1, F), compute_dtype),   # padded layer-2 input
            pltpu.VMEM((B, L + K3 - 1, F2), compute_dtype),  # padded layer-3 input
        ],
        compiler_params=pltpu.CompilerParams(
            # Batch-tile axis is embarrassingly parallel: shards across the two
            # TensorCores on v7x, harmless on single-TC v5e/v6e.
            dimension_semantics=("parallel",),
        ),
    )(cols1, w1, b1, w2, b2, w3, b3, wl, bl)
    return out[:, :nb]


# ----------------------------------------------------------------------------
# Pure-JAX reference (mirrors the PyTorch module in eval mode)
# ----------------------------------------------------------------------------
def ref_forward(x_ncl, p, eps=1e-5):
    def conv(x, w, b, pad):
        y = jax.lax.conv_general_dilated(
            x, w, window_strides=(1,), padding=[(pad, pad)],
            dimension_numbers=('NCH', 'OIH', 'NCH'))
        return y + b[None, :, None]

    def bn_relu(x, g, be, m, v):
        s = g / jnp.sqrt(v + eps)
        return jnp.maximum(x * s[None, :, None] + (be - m * s)[None, :, None], 0.0)

    x = conv(x_ncl, p['w1'], p['b1'], 4)[:, :, :-1]
    x = bn_relu(x, p['g1'], p['be1'], p['m1'], p['v1'])
    x = conv(x, p['w2'], p['b2'], 2)
    x = bn_relu(x, p['g2'], p['be2'], p['m2'], p['v2'])
    x = conv(x, p['w3'], p['b3'], 1)
    x = bn_relu(x, p['g3'], p['be3'], p['m3'], p['v3'])
    pooled = jnp.mean(x, axis=2)
    return pooled @ p['wl'].T + p['bl']


if __name__ == "__main__":
    N, Cin, L = 8, 1, 16           # batch, input_features_d, sequence length
    F, nb = 128, 2                 # n_feature_maps, nb_classes

    key = jax.random.PRNGKey(0)
    ks = jax.random.split(key, 24)
    f32 = jnp.float32

    def bn_params(k0, k1, k2, k3, c):
        return (1.0 + 0.1 * jax.random.normal(k0, (c,), f32),            # gamma
                0.1 * jax.random.normal(k1, (c,), f32),                  # beta
                0.05 * jax.random.normal(k2, (c,), f32),                 # running_mean
                1.0 + 0.1 * jnp.abs(jax.random.normal(k3, (c,), f32)))   # running_var

    g1, be1, m1, v1 = bn_params(ks[2], ks[3], ks[4], ks[5], F)
    g2, be2, m2, v2 = bn_params(ks[8], ks[9], ks[10], ks[11], 2 * F)
    g3, be3, m3, v3 = bn_params(ks[14], ks[15], ks[16], ks[17], F)

    params = {
        'w1': 0.2 * jax.random.normal(ks[0], (F, Cin, 8), f32),
        'b1': 0.1 * jax.random.normal(ks[1], (F,), f32),
        'g1': g1, 'be1': be1, 'm1': m1, 'v1': v1,
        'w2': 0.05 * jax.random.normal(ks[6], (2 * F, F, 5), f32),
        'b2': 0.1 * jax.random.normal(ks[7], (2 * F,), f32),
        'g2': g2, 'be2': be2, 'm2': m2, 'v2': v2,
        'w3': 0.05 * jax.random.normal(ks[12], (F, 2 * F, 3), f32),
        'b3': 0.1 * jax.random.normal(ks[13], (F,), f32),
        'g3': g3, 'be3': be3, 'm3': m3, 'v3': v3,
        'wl': 0.1 * jax.random.normal(ks[18], (nb, F), f32),
        'bl': 0.1 * jax.random.normal(ks[19], (nb,), f32),
    }

    x = jax.random.normal(ks[20], (N, Cin, L), f32)   # NCL, like PyTorch

    ref = jax.block_until_ready(ref_forward(x, params))

    # f32 compute path: tight validation of the fused kernel.
    fwd_f32 = jax.jit(functools.partial(fcnts_forward, compute_dtype=jnp.float32))
    out_f32 = jax.block_until_ready(fwd_f32(x, params))
    assert out_f32.shape == (N, nb), out_f32.shape
    err_f32 = float(jnp.max(jnp.abs(out_f32 - ref)))
    assert err_f32 < 1e-3, f"f32 mismatch vs reference: {err_f32}"

    # bf16 compute path (default, perf config): looser dtype-dependent tolerance.
    fwd_bf16 = jax.jit(functools.partial(fcnts_forward, compute_dtype=jnp.bfloat16))
    out_bf16 = jax.block_until_ready(fwd_bf16(x, params))
    assert out_bf16.shape == (N, nb), out_bf16.shape
    err_bf16 = float(jnp.max(jnp.abs(out_bf16 - ref)))
    assert err_bf16 < 1.5e-1, f"bf16 mismatch vs reference: {err_bf16}"

    print("KERNEL_OK")
</pallas_src>

<mosaic_0001>
module attributes {stable_mosaic.version = 11 : i64} {
  func.func @kernel(%arg0: i32, %arg1: memref<128x8xf32, #tpu.memory_space<vmem>>, %arg2: memref<8x128xf32, #tpu.memory_space<vmem>>, %arg3: memref<1x128xf32, #tpu.memory_space<vmem>>, %arg4: memref<640x256xf32, #tpu.memory_space<vmem>>, %arg5: memref<1x256xf32, #tpu.memory_space<vmem>>, %arg6: memref<768x128xf32, #tpu.memory_space<vmem>>, %arg7: memref<1x128xf32, #tpu.memory_space<vmem>>, %arg8: memref<128x128xf32, #tpu.memory_space<vmem>>, %arg9: memref<1x128xf32, #tpu.memory_space<vmem>>, %arg10: memref<8x128xf32, #tpu.memory_space<vmem>>, %arg11: memref<8x20x128xf32, #tpu.memory_space<vmem>>, %arg12: memref<8x18x256xf32, #tpu.memory_space<vmem>>) attributes {dimension_semantics = [#tpu.dimension_semantics<parallel>], iteration_bounds = array<i64: 1>, scalar_prefetch = 0 : i64, scratch_operands = 2 : i64, tpu.core_type = #tpu.core_type<tc>, window_params = [{transform_indices = @transform_0, window_bounds = array<i64: 128, 8>}, {pipeline_mode = #tpu.pipeline_mode<synchronous>, transform_indices = @transform_1, window_bounds = array<i64: 8, 128>}, {pipeline_mode = #tpu.pipeline_mode<synchronous>, transform_indices = @transform_2, window_bounds = array<i64: 1, 128>}, {pipeline_mode = #tpu.pipeline_mode<synchronous>, transform_indices = @transform_3, window_bounds = array<i64: 640, 256>}, {pipeline_mode = #tpu.pipeline_mode<synchronous>, transform_indices = @transform_4, window_bounds = array<i64: 1, 256>}, {pipeline_mode = #tpu.pipeline_mode<synchronous>, transform_indices = @transform_5, window_bounds = array<i64: 768, 128>}, {pipeline_mode = #tpu.pipeline_mode<synchronous>, transform_indices = @transform_6, window_bounds = array<i64: 1, 128>}, {pipeline_mode = #tpu.pipeline_mode<synchronous>, transform_indices = @transform_7, window_bounds = array<i64: 128, 128>}, {pipeline_mode = #tpu.pipeline_mode<synchronous>, transform_indices = @transform_8, window_bounds = array<i64: 1, 128>}, {transform_indices = @transform_9, window_bounds = array<i64: 8, 128>}]} {
    %c0 = arith.constant 0 : index
    %c0_0 = arith.constant 0 : index
    %0 = vector.load %arg1[%c0, %c0_0] : memref<128x8xf32, #tpu.memory_space<vmem>>, vector<128x8xf32>
    %c0_1 = arith.constant 0 : index
    %c0_2 = arith.constant 0 : index
    %1 = vector.load %arg2[%c0_1, %c0_2] : memref<8x128xf32, #tpu.memory_space<vmem>>, vector<8x128xf32>
    %cst = arith.constant dense<0.000000e+00> : vector<128x128xf32>
    %2 = tpu.matmul %0, %1, %cst {dimension_numbers = #tpu.dot_dimension_numbers<[1], [0], [0], [1], [0, 0, 1, 1], [], []>} : vector<128x8xf32>, vector<8x128xf32>, vector<128x128xf32> -> vector<128x128xf32>
    %c0_3 = arith.constant 0 : index
    %c0_4 = arith.constant 0 : index
    %3 = vector.load %arg3[%c0_3, %c0_4] : memref<1x128xf32, #tpu.memory_space<vmem>>, vector<1x128xf32>
    %4 = vector.broadcast %3 : vector<1x128xf32> to vector<128x128xf32>
    %5 = arith.addf %2, %4 : vector<128x128xf32>
    %cst_5 = arith.constant 0.000000e+00 : f32
    %6 = vector.broadcast %cst_5 : f32 to vector<128x128xf32>
    %7 = arith.maximumf %5, %6 : vector<128x128xf32>
    %cst_6 = arith.constant 0.000000e+00 : f32
    %8 = vector.broadcast %cst_6 : f32 to vector<8x2x128xf32>
    %c0_7 = arith.constant 0 : index
    %c0_8 = arith.constant 0 : index
    %c0_9 = arith.constant 0 : index
    %9 = vector.load %arg11[%c0_7, %c0_8, %c0_9] : memref<8x20x128xf32, #tpu.memory_space<vmem>>, vector<8x2x128xf32>
    tpu.vector_store %arg11[%c0_7, %c0_8, %c0_9], %8 {strides = array<i32>} : memref<8x20x128xf32, #tpu.memory_space<vmem>>, vector<8x2x128xf32>,
    %cst_10 = arith.constant 0.000000e+00 : f32
    %10 = vector.broadcast %cst_10 : f32 to vector<8x2x128xf32>
    %c0_11 = arith.constant 0 : index
    %c18 = arith.constant 18 : index
    %c0_12 = arith.constant 0 : index
    %11 = vector.load %arg11[%c0_11, %c18, %c0_12] : memref<8x20x128xf32, #tpu.memory_space<vmem>>, vector<8x2x128xf32>
    tpu.vector_store %arg11[%c0_11, %c18, %c0_12], %10 {strides = array<i32>} : memref<8x20x128xf32, #tpu.memory_space<vmem>>, vector<8x2x128xf32>,
    %12 = vector.shape_cast %7 : vector<128x128xf32> to vector<8x16x128xf32>
    %c0_13 = arith.constant 0 : index
    %c2 = arith.constant 2 : index
    %c0_14 = arith.constant 0 : index
    %13 = vector.load %arg11[%c0_13, %c2, %c0_14] : memref<8x20x128xf32, #tpu.memory_space<vmem>>, vector<8x16x128xf32>
    tpu.vector_store %arg11[%c0_13, %c2, %c0_14], %12 {strides = array<i32>} : memref<8x20x128xf32, #tpu.memory_space<vmem>>, vector<8x16x128xf32>,
    %c0_15 = arith.constant 0 : index
    %c0_16 = arith.constant 0 : index
    %c0_17 = arith.constant 0 : index
    %14 = vector.load %arg11[%c0_15, %c0_16, %c0_17] : memref<8x20x128xf32, #tpu.memory_space<vmem>>, vector<8x16x128xf32>
    %c0_18 = arith.constant 0 : index
    %c1 = arith.constant 1 : index
    %c0_19 = arith.constant 0 : index
    %15 = vector.load %arg11[%c0_18, %c1, %c0_19] : memref<8x20x128xf32, #tpu.memory_space<vmem>>, vector<8x16x128xf32>
    %c0_20 = arith.constant 0 : index
    %c2_21 = arith.constant 2 : index
    %c0_22 = arith.constant 0 : index
    %16 = vector.load %arg11[%c0_20, %c2_21, %c0_22] : memref<8x20x128xf32, #tpu.memory_space<vmem>>, vector<8x16x128xf32>
    %c0_23 = arith.constant 0 : index
    %c3 = arith.constant 3 : index
    %c0_24 = arith.constant 0 : index
    %17 = vector.load %arg11[%c0_23, %c3, %c0_24] : memref<8x20x128xf32, #tpu.memory_space<vmem>>, vector<8x16x128xf32>
    %c0_25 = arith.constant 0 : index
    %c4 = arith.constant 4 : index
    %c0_26 = arith.constant 0 : index
    %18 = vector.load %arg11[%c0_25, %c4, %c0_26] : memref<8x20x128xf32, #tpu.memory_space<vmem>>, vector<8x16x128xf32>
    %19 = tpu.concatenate %14, %15, %16, %17, %18 in 2 : vector<8x16x128xf32>, vector<8x16x128xf32>, vector<8x16x128xf32>, vector<8x16x128xf32>, vector<8x16x128xf32> -> vector<8x16x640xf32>
    %20 = vector.shape_cast %19 : vector<8x16x640xf32> to vector<128x640xf32>
    %c0_27 = arith.constant 0 : index
    %c0_28 = arith.constant 0 : index
    %21 = vector.load %arg4[%c0_27, %c0_28] : memref<640x256xf32, #tpu.memory_space<vmem>>, vector<640x256xf32>
    %cst_29 = arith.constant dense<0.000000e+00> : vector<128x256xf32>
    %22 = tpu.matmul %20, %21, %cst_29 {dimension_numbers = #tpu.dot_dimension_numbers<[1], [0], [0], [1], [0, 0, 1, 1], [], []>} : vector<128x640xf32>, vector<640x256xf32>, vector<128x256xf32> -> vector<128x256xf32>
    %c0_30 = arith.constant 0 : index
    %c0_31 = arith.constant 0 : index
    %23 = vector.load %arg5[%c0_30, %c0_31] : memref<1x256xf32, #tpu.memory_space<vmem>>, vector<1x256xf32>
    %24 = vector.broadcast %23 : vector<1x256xf32> to vector<128x256xf32>
    %25 = arith.addf %22, %24 : vector<128x256xf32>
    %cst_32 = arith.constant 0.000000e+00 : f32
    %26 = vector.broadcast %cst_32 : f32 to vector<128x256xf32>
    %27 = arith.maximumf %25, %26 : vector<128x256xf32>
    %cst_33 = arith.constant 0.000000e+00 : f32
    %28 = vector.broadcast %cst_33 : f32 to vector<8x1x256xf32>
    %c0_34 = arith.constant 0 : index
    %c0_35 = arith.constant 0 : index
    %c0_36 = arith.constant 0 : index
    %29 = vector.load %arg12[%c0_34, %c0_35, %c0_36] : memref<8x18x256xf32, #tpu.memory_space<vmem>>, vector<8x1x256xf32>
    tpu.vector_store %arg12[%c0_34, %c0_35, %c0_36], %28 {strides = array<i32>} : memref<8x18x256xf32, #tpu.memory_space<vmem>>, vector<8x1x256xf32>,
    %cst_37 = arith.constant 0.000000e+00 : f32
    %30 = vector.broadcast %cst_37 : f32 to vector<8x1x256xf32>
    %c0_38 = arith.constant 0 : index
    %c17 = arith.constant 17 : index
    %c0_39 = arith.constant 0 : index
    %31 = vector.load %arg12[%c0_38, %c17, %c0_39] : memref<8x18x256xf32, #tpu.memory_space<vmem>>, vector<8x1x256xf32>
    tpu.vector_store %arg12[%c0_38, %c17, %c0_39], %30 {strides = array<i32>} : memref<8x18x256xf32, #tpu.memory_space<vmem>>, vector<8x1x256xf32>,
    %32 = vector.shape_cast %27 : vector<128x256xf32> to vector<8x16x256xf32>
    %c0_40 = arith.constant 0 : index
    %c1_41 = arith.constant 1 : index
    %c0_42 = arith.constant 0 : index
    %33 = vector.load %arg12[%c0_40, %c1_41, %c0_42] : memref<8x18x256xf32, #tpu.memory_space<vmem>>, vector<8x16x256xf32>
    tpu.vector_store %arg12[%c0_40, %c1_41, %c0_42], %32 {strides = array<i32>} : memref<8x18x256xf32, #tpu.memory_space<vmem>>, vector<8x16x256xf32>,
    %c0_43 = arith.constant 0 : index
    %c0_44 = arith.constant 0 : index
    %c0_45 = arith.constant 0 : index
    %34 = vector.load %arg12[%c0_43, %c0_44, %c0_45] : memref<8x18x256xf32, #tpu.memory_space<vmem>>, vector<8x16x256xf32>
    %c0_46 = arith.constant 0 : index
    %c1_47 = arith.constant 1 : index
    %c0_48 = arith.constant 0 : index
    %35 = vector.load %arg12[%c0_46, %c1_47, %c0_48] : memref<8x18x256xf32, #tpu.memory_space<vmem>>, vector<8x16x256xf32>
    %c0_49 = arith.constant 0 : index
    %c2_50 = arith.constant 2 : index
    %c0_51 = arith.constant 0 : index
    %36 = vector.load %arg12[%c0_49, %c2_50, %c0_51] : memref<8x18x256xf32, #tpu.memory_space<vmem>>, vector<8x16x256xf32>
    %37 = tpu.concatenate %34, %35, %36 in 2 : vector<8x16x256xf32>, vector<8x16x256xf32>, vector<8x16x256xf32> -> vector<8x16x768xf32>
    %38 = vector.shape_cast %37 : vector<8x16x768xf32> to vector<128x768xf32>
    %c0_52 = arith.constant 0 : index
    %c0_53 = arith.constant 0 : index
    %39 = vector.load %arg6[%c0_52, %c0_53] : memref<768x128xf32, #tpu.memory_space<vmem>>, vector<768x128xf32>
    %cst_54 = arith.constant dense<0.000000e+00> : vector<128x128xf32>
    %40 = tpu.matmul %38, %39, %cst_54 {dimension_numbers = #tpu.dot_dimension_numbers<[1], [0], [0], [1], [0, 0, 1, 1], [], []>} : vector<128x768xf32>, vector<768x128xf32>, vector<128x128xf32> -> vector<128x128xf32>
    %c0_55 = arith.constant 0 : index
    %c0_56 = arith.constant 0 : index
    %41 = vector.load %arg7[%c0_55, %c0_56] : memref<1x128xf32, #tpu.memory_space<vmem>>, vector<1x128xf32>
    %42 = vector.broadcast %41 : vector<1x128xf32> to vector<128x128xf32>
    %43 = arith.addf %40, %42 : vector<128x128xf32>
    %cst_57 = arith.constant 0.000000e+00 : f32
    %44 = vector.broadcast %cst_57 : f32 to vector<128x128xf32>
    %45 = arith.maximumf %43, %44 : vector<128x128xf32>
    %46 = vector.shape_cast %45 : vector<128x128xf32> to vector<8x16x128xf32>
    %cst_58 = arith.constant dense<0.000000e+00> : vector<8x128xf32>
    %47 = vector.multi_reduction <add>, %46, %cst_58 [1] : vector<8x16x128xf32> to vector<8x128xf32>
    %c0_59 = arith.constant 0 : index
    %c0_60 = arith.constant 0 : index
    %48 = vector.load %arg8[%c0_59, %c0_60] : memref<128x128xf32, #tpu.memory_space<vmem>>, vector<128x128xf32>
    %cst_61 = arith.constant dense<0.000000e+00> : vector<8x128xf32>
    %49 = tpu.matmul %47, %48, %cst_61 {dimension_numbers = #tpu.dot_dimension_numbers<[1], [0], [0], [1], [0, 0, 1, 1], [], []>} : vector<8x128xf32>, vector<128x128xf32>, vector<8x128xf32> -> vector<8x128xf32>
    %c0_62 = arith.constant 0 : index
    %c0_63 = arith.constant 0 : index
    %50 = vector.load %arg9[%c0_62, %c0_63] : memref<1x128xf32, #tpu.memory_space<vmem>>, vector<1x128xf32>
    %51 = vector.broadcast %50 : vector<1x128xf32> to vector<8x128xf32>
    %52 = arith.addf %49, %51 : vector<8x128xf32>
    %c0_64 = arith.constant 0 : index
    %c0_65 = arith.constant 0 : index
    %53 = vector.load %arg10[%c0_64, %c0_65] : memref<8x128xf32, #tpu.memory_space<vmem>>, vector<8x128xf32>
    tpu.vector_store %arg10[%c0_64, %c0_65], %52 {strides = array<i32>} : memref<8x128xf32, #tpu.memory_space<vmem>>, vector<8x128xf32>,
    return
  }
  func.func @transform_0(%arg0: i32) -> (i32, i32) {
    %c0_i32 = arith.constant 0 : i32
    %c0_i32_0 = arith.constant 0 : i32
    return %arg0, %c0_i32 : i32, i32
  }
  func.func @transform_1(%arg0: i32) -> (i32, i32) {
    %c0_i32 = arith.constant 0 : i32
    %c0_i32_0 = arith.constant 0 : i32
    %c0_i32_1 = arith.constant 0 : i32
    return %c0_i32, %c0_i32_0 : i32, i32
  }
  func.func @transform_2(%arg0: i32) -> (i32, i32) {
    %c0_i32 = arith.constant 0 : i32
    %c0_i32_0 = arith.constant 0 : i32
    %c0_i32_1 = arith.constant 0 : i32
    return %c0_i32, %c0_i32_0 : i32, i32
  }
  func.func @transform_3(%arg0: i32) -> (i32, i32) {
    %c0_i32 = arith.constant 0 : i32
    %c0_i32_0 = arith.constant 0 : i32
    %c0_i32_1 = arith.constant 0 : i32
    return %c0_i32, %c0_i32_0 : i32, i32
  }
  func.func @transform_4(%arg0: i32) -> (i32, i32) {
    %c0_i32 = arith.constant 0 : i32
    %c0_i32_0 = arith.constant 0 : i32
    %c0_i32_1 = arith.constant 0 : i32
    return %c0_i32, %c0_i32_0 : i32, i32
  }
  func.func @transform_5(%arg0: i32) -> (i32, i32) {
    %c0_i32 = arith.constant 0 : i32
    %c0_i32_0 = arith.constant 0 : i32
    %c0_i32_1 = arith.constant 0 : i32
    return %c0_i32, %c0_i32_0 : i32, i32
  }
  func.func @transform_6(%arg0: i32) -> (i32, i32) {
    %c0_i32 = arith.constant 0 : i32
    %c0_i32_0 = arith.constant 0 : i32
    %c0_i32_1 = arith.constant 0 : i32
    return %c0_i32, %c0_i32_0 : i32, i32
  }
  func.func @transform_7(%arg0: i32) -> (i32, i32) {
    %c0_i32 = arith.constant 0 : i32
    %c0_i32_0 = arith.constant 0 : i32
    %c0_i32_1 = arith.constant 0 : i32
    return %c0_i32, %c0_i32_0 : i32, i32
  }
  func.func @transform_8(%arg0: i32) -> (i32, i32) {
    %c0_i32 = arith.constant 0 : i32
    %c0_i32_0 = arith.constant 0 : i32
    %c0_i32_1 = arith.constant 0 : i32
    return %c0_i32, %c0_i32_0 : i32, i32
  }
  func.func @transform_9(%arg0: i32) -> (i32, i32) {
    %c0_i32 = arith.constant 0 : i32
    %c0_i32_0 = arith.constant 0 : i32
    return %arg0, %c0_i32 : i32, i32
  }
}

</mosaic_0001>

<bundles_post_ra>
// kernel: fcnts_forward.1
= control target key start
LH: loop header
LB: loop body
LE: loop exit
PB: predicated region body
PF: predicated region fallthrough
CT: control target
= control target key end

     0   :  { %vm56_vm0 = vcmask 64512   ;;  %vm1148_vm2 = vcmask 1040384   ;;  %vm1437_vm3 = vcmask 1046528   ;;  %vm1582_vm4 = vcmask 1045504   ;;  %s4643_s1 = inlined_call_operand.vmem [shape: f32[8,128], index: 1, kind: input, shape index: {}]   ;;  %s4644_s0 = inlined_call_operand.vmem [shape: f32[128,8], index: 0, kind: input, shape index: {}]   ;;  %s4645_s3 = inlined_call_operand.vmem [shape: f32[640,256], index: 3, kind: input, shape index: {}]   ;;  %s4646_s2 = inlined_call_operand.vmem [shape: f32[1,128], index: 2, kind: input, shape index: {}]   ;;  %s4647_s5 = inlined_call_operand.vmem [shape: f32[768,128], index: 5, kind: input, shape index: {}]   ;;  %s4648_s4 = inlined_call_operand.vmem [shape: f32[1,256], index: 4, kind: input, shape index: {}]   ;;  %s4649_s7 = inlined_call_operand.vmem [shape: f32[128,128], index: 7, kind: input, shape index: {}]   ;;  %s4650_s6 = inlined_call_operand.vmem [shape: f32[1,128], index: 6, kind: input, shape index: {}]   ;;  %s4651_s8 = inlined_call_operand.vmem [shape: f32[1,128], index: 8, kind: input, shape index: {}]   ;;  %s4652_s9 = inlined_call_operand.vmem [shape: f32[8,128], index: 9, kind: output, shape index: {}]  }
   0x1   :  { %v48_v0 = vld [vmem:[%s4643_s1] sm:$0xff]  ;;  %v33_v2 = vld [vmem:[%s4644_s0 + $0x8] sm:$0xff]  ;;  %v34_v3 = vld [vmem:[%s4644_s0 + $0x10] sm:$0xff]  ;;  %vm3161_vm5 = vmmov 0   ;;  %vm2336_vm6 = vcmask 1041409   ;;  %vm2338_vm7 = vcmask 1042434  }
   0x2   :  { %v32_v1 = vld [vmem:[%s4644_s0] sm:$0xff]  ;;  %2719 = vmatprep.subr.mxu0 %v48_v0  ;;  %v35_v4 = vld [vmem:[%s4644_s0 + $0x18] sm:$0xff]  ;;  %v379_v6 = vld [vmem:[%s4645_s3 + $0x8] sm:$0xff]  ;;  %vm2340_vm8 = vcmask 1043459   ;;  %vm2342_vm9 = vcmask 1044484   ;;  %vm2344_vm10 = vcmask 1045509  }
   0x3   :  { %2721 = vmatprep.mubr.msk.f32.mxu0 %vm56_vm0, %v32_v1  ;;  %2720 = vmatpush3.msra.mxu0 %v48_v0  ;;  %v36_v5 = vld [vmem:[%s4644_s0 + $0x20] sm:$0xff]  ;;  %v37_v7 = vld [vmem:[%s4644_s0 + $0x28] sm:$0xff]  ;;  %v381_v8 = vld [vmem:[%s4645_s3 + $0x18] sm:$0xff]  ;;  %vm2346_vm11 = vcmask 1046534   ;;  %vm2348_vm12 = vcmask 1047559  }
   0x4   :  { %2722 = vmatmul.mubr.msk.f32.vlgmr.msra.gmra.mrb[0].mxu0 %vm56_vm0, %v33_v2  ;;  %v378_v9 = vld [vmem:[%s4645_s3] sm:$0xff]  ;;  %v380_v10 = vld [vmem:[%s4645_s3 + $0x10] sm:$0xff]  ;;  %v2780_v11 = vpack.c.bf16 %v381_v8, %v379_v6  ;;  %v383_v13 = vld [vmem:[%s4645_s3 + $0x28] sm:$0xff] }
   0x5   :  { %2724 = vmatprep.mubr.msk.f32.mxu0 %vm56_vm0, %v34_v3  ;;  %v2782_v12 = vpack.c.bf16 %v380_v10, %v378_v9  ;;  %v385_v14 = vld [vmem:[%s4645_s3 + $0x38] sm:$0xff]  ;;  %v382_v15 = vld [vmem:[%s4645_s3 + $0x20] sm:$0xff]  ;;  %v384_v17 = vld [vmem:[%s4645_s3 + $0x30] sm:$0xff] }
   0x6   :  { %v2784_v16 = vpack.c.bf16 %v385_v14, %v383_v13  ;;  %v387_v18 = vld [vmem:[%s4645_s3 + $0x48] sm:$0xff]  ;;  %v389_v19 = vld [vmem:[%s4645_s3 + $0x58] sm:$0xff]  ;;  %v38_v20 = vld [vmem:[%s4644_s0 + $0x30] sm:$0xff]  ;;  %2781 = vmatprep.subr.bf16.mxu1 %v2780_v11  ;;  %v2786_v21 = vpack.c.bf16 %v384_v17, %v382_v15 }
   0x7   :  { %2783 = vmatpush1.bf16.msra.mxu1 %v2782_v12  ;;  %v2788_v22 = vpack.c.bf16 %v389_v19, %v387_v18  ;;  %v386_v23 = vld [vmem:[%s4645_s3 + $0x40] sm:$0xff]  ;;  %v388_v24 = vld [vmem:[%s4645_s3 + $0x50] sm:$0xff]  ;;  %v39_v25 = vld [vmem:[%s4644_s0 + $0x38] sm:$0xff] }
   0x8   :  { %2725 = vmatmul.mubr.msk.f32.gmra.mrb[2].mxu0 %vm56_vm0, %v35_v4  ;;  %2785 = vmatprep.subr.bf16.mxu1 %v2784_v16  ;;  %v391_v26 = vld [vmem:[%s4645_s3 + $0x68] sm:$0xff]  ;;  %v393_v27 = vld [vmem:[%s4645_s3 + $0x78] sm:$0xff]  ;;  %v40_v28 = vld [vmem:[%s4644_s0 + $0x40] sm:$0xff]  ;;  %v2790_v29 = vpack.c.bf16 %v388_v24, %v386_v23 }
   0x9   :  { %2727 = vmatprep.mubr.msk.f32.mxu0 %vm56_vm0, %v36_v5  ;;  %v2792_v30 = vpack.c.bf16 %v393_v27, %v391_v26  ;;  %v390_v31 = vld [vmem:[%s4645_s3 + $0x60] sm:$0xff]  ;;  %v392_v32 = vld [vmem:[%s4645_s3 + $0x70] sm:$0xff]  ;;  %v41_v33 = vld [vmem:[%s4644_s0 + $0x48] sm:$0xff] }
   0xa   :  { %v395_v34 = vld [vmem:[%s4645_s3 + $0x88] sm:$0xff]  ;;  %v397_v35 = vld [vmem:[%s4645_s3 + $0x98] sm:$0xff]  ;;  %v42_v36 = vld [vmem:[%s4644_s0 + $0x50] sm:$0xff]  ;;  %v2794_v37 = vpack.c.bf16 %v392_v32, %v390_v31 }
   0xb   :  { %2787 = vmatpush1.bf16.msra.mxu1 %v2786_v21  ;;  %v2796_v38 = vpack.c.bf16 %v397_v35, %v395_v34  ;;  %v394_v39 = vld [vmem:[%s4645_s3 + $0x80] sm:$0xff]  ;;  %v396_v40 = vld [vmem:[%s4645_s3 + $0x90] sm:$0xff]  ;;  %v43_v41 = vld [vmem:[%s4644_s0 + $0x58] sm:$0xff] }
   0xc   :  { %2728 = vmatmul.mubr.msk.f32.gmra.mrb[4].mxu0 %vm56_vm0, %v37_v7  ;;  %2789 = vmatprep.subr.bf16.mxu1 %v2788_v22  ;;  %v399_v42 = vld [vmem:[%s4645_s3 + $0xa8] sm:$0xff]  ;;  %v401_v43 = vld [vmem:[%s4645_s3 + $0xb8] sm:$0xff]  ;;  %v44_v44 = vld [vmem:[%s4644_s0 + $0x60] sm:$0xff]  ;;  %v2798_v45 = vpack.c.bf16 %v396_v40, %v394_v39 }
   0xd   :  { %2730 = vmatprep.mubr.msk.f32.mxu0 %vm56_vm0, %v38_v20  ;;  %v2800_v46 = vpack.c.bf16 %v401_v43, %v399_v42  ;;  %v398_v47 = vld [vmem:[%s4645_s3 + $0xa0] sm:$0xff]  ;;  %v400_v48 = vld [vmem:[%s4645_s3 + $0xb0] sm:$0xff]  ;;  %v45_v49 = vld [vmem:[%s4644_s0 + $0x68] sm:$0xff]  ;;  %v3159_v42 = vmov 0.0  }
   0xe   :  { %v403_v50 = vld [vmem:[%s4645_s3 + $0xc8] sm:$0xff]  ;;  %v405_v51 = vld [vmem:[%s4645_s3 + $0xd8] sm:$0xff]  ;;  %v46_v52 = vld [vmem:[%s4644_s0 + $0x70] sm:$0xff]  ;;  %v2802_v53 = vpack.c.bf16 %v400_v48, %v398_v47  ;;  %266 = vst [vmem:[#allocation2] sm:$0x3] %v3159_v42 }
   0xf   :  { %2791 = vmatpush1.bf16.msra.mxu1 %v2790_v29  ;;  %v2804_v54 = vpack.c.bf16 %v405_v51, %v403_v50  ;;  %v402_v55 = vld [vmem:[%s4645_s3 + $0xc0] sm:$0xff]  ;;  %v404_v56 = vld [vmem:[%s4645_s3 + $0xd0] sm:$0xff]  ;;  %v47_v57 = vld [vmem:[%s4644_s0 + $0x78] sm:$0xff]  ;;  %267 = vst [vmem:[#allocation2 + $0x18] sm:$0x3] %v3159_v42 }
  0x10   :  { %2731 = vmatmul.mubr.msk.f32.gmra.mrb[6].mxu0 %vm56_vm0, %v39_v25  ;;  %2793 = vmatprep.subr.bf16.mxu1 %v2792_v30  ;;  %v407_v58 = vld [vmem:[%s4645_s3 + $0xe8] sm:$0xff]  ;;  %v409_v59 = vld [vmem:[%s4645_s3 + $0xf8] sm:$0xff]  ;;  %v2806_v60 = vpack.c.bf16 %v404_v56, %v402_v55  ;;  %v406_v62 = vld [vmem:[%s4645_s3 + $0xe0] sm:$0xff]  ;;  %268 = vst [vmem:[#allocation2 + $0x30] sm:$0x3] %v3159_v42 }
  0x11   :  { %2733 = vmatprep.mubr.msk.f32.mxu0 %vm56_vm0, %v40_v28  ;;  %v2808_v61 = vpack.c.bf16 %v409_v59, %v407_v58  ;;  %v408_v63 = vld [vmem:[%s4645_s3 + $0xf0] sm:$0xff]  ;;  %v411_v0 = vld [vmem:[%s4645_s3 + $0x108] sm:$0xff]  ;;  %v413_v1 = vld [vmem:[%s4645_s3 + $0x118] sm:$0xff]  ;;  %269 = vst [vmem:[#allocation2 + $0x48] sm:$0x3] %v3159_v42 }
  0x12   :  { %v2810_v2 = vpack.c.bf16 %v408_v63, %v406_v62  ;;  %v2812_v3 = vpack.c.bf16 %v413_v1, %v411_v0  ;;  %v410_v4 = vld [vmem:[%s4645_s3 + $0x100] sm:$0xff]  ;;  %v412_v5 = vld [vmem:[%s4645_s3 + $0x110] sm:$0xff]  ;;  %v415_v6 = vld [vmem:[%s4645_s3 + $0x128] sm:$0xff]  ;;  %270 = vst [vmem:[#allocation2 + $0x60] sm:$0x3] %v3159_v42 }
  0x13   :  { %2795 = vmatpush1.bf16.msra.mxu1 %v2794_v37  ;;  %v417_v7 = vld [vmem:[%s4645_s3 + $0x138] sm:$0xff]  ;;  %v2814_v8 = vpack.c.bf16 %v412_v5, %v410_v4  ;;  %v414_v10 = vld [vmem:[%s4645_s3 + $0x120] sm:$0xff]  ;;  %v416_v11 = vld [vmem:[%s4645_s3 + $0x130] sm:$0xff]  ;;  %271 = vst [vmem:[#allocation2 + $0x78] sm:$0x3] %v3159_v42 }
  0x14   :  { %2734 = vmatmul.mubr.msk.f32.gmra.mrb[8].mxu0 %vm56_vm0, %v41_v33  ;;  %2797 = vmatprep.subr.bf16.mxu1 %v2796_v38  ;;  %v2816_v9 = vpack.c.bf16 %v417_v7, %v415_v6  ;;  %v419_v12 = vld [vmem:[%s4645_s3 + $0x148] sm:$0xff]  ;;  %v421_v13 = vld [vmem:[%s4645_s3 + $0x158] sm:$0xff]  ;;  %v2818_v14 = vpack.c.bf16 %v416_v11, %v414_v10  ;;  %v418_v16 = vld [vmem:[%s4645_s3 + $0x140] sm:$0xff]  ;;  %272 = vst [vmem:[#allocation2 + $0x90] sm:$0x3] %v3159_v42 }
  0x15   :  { %2736 = vmatprep.mubr.msk.f32.mxu0 %vm56_vm0, %v42_v36  ;;  %v2820_v15 = vpack.c.bf16 %v421_v13, %v419_v12  ;;  %v420_v17 = vld [vmem:[%s4645_s3 + $0x150] sm:$0xff]  ;;  %v423_v18 = vld [vmem:[%s4645_s3 + $0x168] sm:$0xff]  ;;  %v425_v19 = vld [vmem:[%s4645_s3 + $0x178] sm:$0xff]  ;;  %273 = vst [vmem:[#allocation2 + $0xa8] sm:$0x3] %v3159_v42 }
  0x16   :  { %v2822_v20 = vpack.c.bf16 %v420_v17, %v418_v16  ;;  %v2824_v21 = vpack.c.bf16 %v425_v19, %v423_v18  ;;  %v422_v22 = vld [vmem:[%s4645_s3 + $0x160] sm:$0xff]  ;;  %v424_v23 = vld [vmem:[%s4645_s3 + $0x170] sm:$0xff]  ;;  %v427_v24 = vld [vmem:[%s4645_s3 + $0x188] sm:$0xff]  ;;  %274 = vst [vmem:[#allocation2 + $0x12] sm:$0x3] %v3159_v42 }
  0x17   :  { %2799 = vmatpush1.bf16.msra.mxu1 %v2798_v45  ;;  %v429_v25 = vld [vmem:[%s4645_s3 + $0x198] sm:$0xff]  ;;  %v2826_v26 = vpack.c.bf16 %v424_v23, %v422_v22  ;;  %v426_v28 = vld [vmem:[%s4645_s3 + $0x180] sm:$0xff]  ;;  %v428_v29 = vld [vmem:[%s4645_s3 + $0x190] sm:$0xff]  ;;  %275 = vst [vmem:[#allocation2 + $0x2a] sm:$0x3] %v3159_v42 }
  0x18   :  { %2737 = vmatmul.mubr.msk.f32.gmra.mrb[10].mxu0 %vm56_vm0, %v43_v41  ;;  %2801 = vmatprep.subr.bf16.mxu1 %v2800_v46  ;;  %v2828_v27 = vpack.c.bf16 %v429_v25, %v427_v24  ;;  %v2830_v30 = vpack.c.bf16 %v428_v29, %v426_v28  ;;  %v431_v31 = vld [vmem:[%s4645_s3 + $0x1a8] sm:$0xff]  ;;  %v433_v32 = vld [vmem:[%s4645_s3 + $0x1b8] sm:$0xff]  ;;  %v430_v34 = vld [vmem:[%s4645_s3 + $0x1a0] sm:$0xff]  ;;  %276 = vst [vmem:[#allocation2 + $0x42] sm:$0x3] %v3159_v42 }
  0x19   :  { %2739 = vmatprep.mubr.msk.f32.mxu0 %vm56_vm0, %v44_v44  ;;  %v2832_v33 = vpack.c.bf16 %v433_v32, %v431_v31  ;;  %v432_v35 = vld [vmem:[%s4645_s3 + $0x1b0] sm:$0xff]  ;;  %v435_v37 = vld [vmem:[%s4645_s3 + $0x1c8] sm:$0xff]  ;;  %v437_v38 = vld [vmem:[%s4645_s3 + $0x1d8] sm:$0xff]  ;;  %277 = vst [vmem:[#allocation2 + $0x5a] sm:$0x3] %v3159_v42 }
  0x1a   :  { %v2834_v36 = vpack.c.bf16 %v432_v35, %v430_v34  ;;  %v2836_v39 = vpack.c.bf16 %v437_v38, %v435_v37  ;;  %v434_v40 = vld [vmem:[%s4645_s3 + $0x1c0] sm:$0xff]  ;;  %v436_v41 = vld [vmem:[%s4645_s3 + $0x1d0] sm:$0xff]  ;;  %278 = vst [vmem:[#allocation2 + $0x72] sm:$0x3] %v3159_v42  ;;  %279 = vst [vmem:[#allocation2 + $0x8a] sm:$0x3] %v3159_v42 }
  0x1b   :  { %2803 = vmatpush1.bf16.msra.mxu1 %v2802_v53  ;;  %280 = vst [vmem:[#allocation2 + $0xa2] sm:$0x3] %v3159_v42  ;;  %281 = vst [vmem:[#allocation2 + $0xba] sm:$0x3] %v3159_v42  ;;  %v2838_v43 = vpack.c.bf16 %v436_v41, %v434_v40  ;;  %v439_v44 = vld [vmem:[%s4645_s3 + $0x1e8] sm:$0xff]  ;;  %v441_v45 = vld [vmem:[%s4645_s3 + $0x1f8] sm:$0xff] }
  0x1c   :  { %2740 = vmatmul.mubr.msk.f32.gmra.mrb[12].mxu0 %vm56_vm0, %v45_v49  ;;  %2805 = vmatprep.subr.bf16.mxu1 %v2804_v54  ;;  %v2840_v46 = vpack.c.bf16 %v441_v45, %v439_v44  ;;  %v438_v47 = vld [vmem:[%s4645_s3 + $0x1e0] sm:$0xff]  ;;  %v440_v48 = vld [vmem:[%s4645_s3 + $0x1f0] sm:$0xff]  ;;  %v443_v50 = vld [vmem:[%s4645_s3 + $0x208] sm:$0xff] }
  0x1d   :  { %2742 = vmatprep.mubr.msk.f32.mxu0 %vm56_vm0, %v46_v52  ;;  %v2842_v49 = vpack.c.bf16 %v440_v48, %v438_v47  ;;  %v445_v51 = vld [vmem:[%s4645_s3 + $0x218] sm:$0xff]  ;;  %v3496_v53 = vld [vmem:[%s4646_s2] ss:$0 sm:$0xff]  ;;  %v444_v5 = vld [vmem:[%s4645_s3 + $0x210] sm:$0xff] }
  0x1e   :  { %v2844_v52 = vpack.c.bf16 %v445_v51, %v443_v50  ;;  %v442_v4 = vld [vmem:[%s4645_s3 + $0x200] sm:$0xff]  ;;  %v448_v18 = vld [vmem:[%s4645_s3 + $0x230] sm:$0xff]  ;;  %v453_v22 = vld [vmem:[%s4645_s3 + $0x258] sm:$0xff] }
  0x1f   :  { %2807 = vmatpush1.bf16.msra.mxu1 %v2806_v60  ;;  %v2846_v11 = vpack.c.bf16 %v444_v5, %v442_v4  ;;  %v446_v13 = vld [vmem:[%s4645_s3 + $0x220] sm:$0xff]  ;;  %v452_v32 = vld [vmem:[%s4645_s3 + $0x250] sm:$0xff]  ;;  %v457_v37 = vld [vmem:[%s4645_s3 + $0x278] sm:$0xff] }
  0x20   :  { %2743 = vmatmul.mubr.msk.f32.gmra.mrb[14].mxu0 %vm56_vm0, %v47_v57  ;;  %2809 = vmatprep.subr.bf16.mxu1 %v2808_v61  ;;  %v450_v31 = vld [vmem:[%s4645_s3 + $0x240] sm:$0xff]  ;;  %v459_v50 = vld [vmem:[%s4645_s3 + $0x288] sm:$0xff]  ;;  %v461_v51 = vld [vmem:[%s4645_s3 + $0x298] sm:$0xff] }
  0x21   :  { %v2854_v40 = vpack.c.bf16 %v452_v32, %v450_v31  ;;  %v454_v45 = vld [vmem:[%s4645_s3 + $0x260] sm:$0xff]  ;;  %v2860_v5 = vpack.c.bf16 %v461_v51, %v459_v50  ;;  %v467_v31 = vld [vmem:[%s4645_s3 + $0x2c8] sm:$0xff]  ;;  %v469_v32 = vld [vmem:[%s4645_s3 + $0x2d8] sm:$0xff] }
  0x23   :  { %2811 = vmatpush1.bf16.msra.mxu1 %v2810_v2 }
  0x24   :  { %2813 = vmatprep.subr.bf16.mxu1 %v2812_v3 }
  0x27   :  { %2815 = vmatpush1.bf16.msra.mxu1 %v2814_v8  ;;  %v447_v8 = vld [vmem:[%s4645_s3 + $0x228] sm:$0xff] }
  0x28   :  { %2817 = vmatprep.subr.bf16.mxu1 %v2816_v9  ;;  %v449_v9 = vld [vmem:[%s4645_s3 + $0x238] sm:$0xff] }
  0x29   :  { %v2848_v17 = vpack.c.bf16 %v449_v9, %v447_v8  ;;  %v460_v8 = vld [vmem:[%s4645_s3 + $0x290] sm:$0xff] }
  0x2b   :  { %2819 = vmatpush1.bf16.msra.mxu1 %v2818_v14 }
  0x2c   :  { %2821 = vmatprep.subr.bf16.mxu1 %v2820_v15 }
  0x2f   :  { %2823 = vmatpush1.bf16.msra.mxu1 %v2822_v20 }
  0x30   :  { %2825 = vmatprep.subr.bf16.mxu1 %v2824_v21  ;;  %v451_v21 = vld [vmem:[%s4645_s3 + $0x248] sm:$0xff] }
  0x33   :  { %2827 = vmatpush1.bf16.msra.mxu1 %v2826_v26  ;;  %v2850_v26 = vpack.c.bf16 %v448_v18, %v446_v13 }
  0x34   :  { %2829 = vmatprep.subr.bf16.mxu1 %v2828_v27 }
  0x37   :  { %2831 = vmatpush1.bf16.msra.mxu1 %v2830_v30  ;;  %v2852_v30 = vpack.c.bf16 %v453_v22, %v451_v21 }
  0x38   :  { %2833 = vmatprep.subr.bf16.mxu1 %v2832_v33 }
  0x3b   :  { %2835 = vmatpush1.bf16.msra.mxu1 %v2834_v36  ;;  %v455_v36 = vld [vmem:[%s4645_s3 + $0x268] sm:$0xff] }
  0x3c   :  { %2837 = vmatprep.subr.bf16.mxu1 %v2836_v39  ;;  %v2856_v44 = vpack.c.bf16 %v457_v37, %v455_v36 }
  0x3f   :  { %2839 = vmatpush1.bf16.msra.mxu1 %v2838_v43 }
  0x40   :  { %2841 = vmatprep.subr.bf16.mxu1 %v2840_v46  ;;  %v456_v46 = vld [vmem:[%s4645_s3 + $0x270] sm:$0xff] }
  0x43   :  { %2843 = vmatpush1.bf16.msra.mxu1 %v2842_v49 }
  0x44   :  { %2845 = vmatprep.subr.bf16.mxu1 %v2844_v52 }
  0xd7   :  { %v2723_v54 = vpop.f32.mrb[0].mxu0 }
  0xd8   :  { %v3499_v55 = vadd.f32 %v2723_v54, %v3496_v53  ;;  %v171_v56 = vpop.f32.mrb[1].mxu0 }
  0xd9   :  { %v3502_v57 = vadd.f32 %v3496_v53, %v171_v56 }
  0xda   :  { %v251_v58 = vmax.f32 %v3499_v55, 0.0  ;;  %v520_v55 = vld [vmem:[%s4645_s3 + $0x470] sm:$0xff] }
  0xdb   :  { %v250_v59 = vmax.f32 %v3502_v57, 0.0  ;;  %v2726_v60 = vpop.f32.mrb[2].mxu0  ;;  %v514_v57 = vld [vmem:[%s4645_s3 + $0x440] sm:$0xff] }
  0xdc   :  { %283 = vst [vmem:[#allocation2 + $0xa] sm:$0xff] %v251_v58  ;;  %v3509_v61 = vadd.f32 %v2726_v60, %v3496_v53  ;;  %v181_v62 = vpop.f32.mrb[3].mxu0  ;;  %v2858_v60 = vpack.c.bf16 %v456_v46, %v454_v45  ;;  %v466_v45 = vld [vmem:[%s4645_s3 + $0x2c0] sm:$0xff] }
  0xdd   :  { %282 = vst [vmem:[#allocation2 + $0x2] sm:$0xff] %v250_v59  ;;  %v3514_v63 = vadd.f32 %v3496_v53, %v181_v62 }
  0xde   :  { %v253_v0 = vmax.f32 %v3509_v61, 0.0  ;;  %v531_v61 = vld [vmem:[%s4645_s3 + $0x4c8] sm:$0xff] }
  0xdf   :  { %v252_v1 = vmax.f32 %v3514_v63, 0.0  ;;  %v2729_v2 = vpop.f32.mrb[4].mxu0  ;;  %v527_v63 = vld [vmem:[%s4645_s3 + $0x4a8] sm:$0xff] }
  0xe0   :  { %285 = vst [vmem:[#allocation2 + $0x22] sm:$0xff] %v253_v0  ;;  %v3521_v3 = vadd.f32 %v2729_v2, %v3496_v53  ;;  %v191_v6 = vpop.f32.mrb[5].mxu0 }
  0xe1   :  { %284 = vst [vmem:[#allocation2 + $0x1a] sm:$0xff] %v252_v1  ;;  %v3532_v7 = vadd.f32 %v3496_v53, %v191_v6  ;;  %v458_v6 = vld [vmem:[%s4645_s3 + $0x280] sm:$0xff] }
  0xe2   :  { %v255_v10 = vmax.f32 %v3521_v3, 0.0  ;;  %v2862_v18 = vpack.c.bf16 %v460_v8, %v458_v6 }
  0xe3   :  { %v254_v12 = vmax.f32 %v3532_v7, 0.0  ;;  %v2732_v14 = vpop.f32.mrb[6].mxu0  ;;  %v537_v7 = vld [vmem:[%s4645_s3 + $0x4f8] sm:$0xff] }
  0xe4   :  { %v314_v15 = vld [vmem:[#allocation2 + $0x1] sm:$0xff]  ;;  %287 = vst [vmem:[#allocation2 + $0x3a] sm:$0xff] %v255_v10  ;;  %v3551_v19 = vadd.f32 %v2732_v14, %v3496_v53  ;;  %v201_v20 = vpop.f32.mrb[7].mxu0  ;;  %v315_v24 = vld [vmem:[#allocation2 + $0x9] sm:$0xff] }
  0xe5   :  { %v298_v16 = vld [vmem:[#allocation2] sm:$0xff]  ;;  %614 = vmatprep.mubr.f32.mxu1 %v314_v15  ;;  %286 = vst [vmem:[#allocation2 + $0x32] sm:$0xff] %v254_v12  ;;  %v3562_v23 = vadd.f32 %v3496_v53, %v201_v20  ;;  %v299_v35 = vld [vmem:[#allocation2 + $0x8] sm:$0xff]  ;;  %v465_v15 = vld [vmem:[%s4645_s3 + $0x2b8] sm:$0xff] }
  0xe6   :  { %615 = vmatmul.mubr.f32.vlgmr.msra.gmra.mrb[0].mxu1 %v298_v16  ;;  %v257_v25 = vmax.f32 %v3551_v19, 0.0  ;;  %v463_v14 = vld [vmem:[%s4645_s3 + $0x2a8] sm:$0xff] }
  0xe7   :  { %2847 = vmatpush1.bf16.msra.mxu1 %v2846_v11  ;;  %620 = vmatprep.mubr.f32.mxu1 %v315_v24  ;;  %v256_v27 = vmax.f32 %v3562_v23, 0.0  ;;  %v2735_v28 = vpop.f32.mrb[8].mxu0  ;;  %v2864_v22 = vpack.c.bf16 %v465_v15, %v463_v14  ;;  %v462_v24 = vld [vmem:[%s4645_s3 + $0x2a0] sm:$0xff]  ;;  %v476_v15 = vld [vmem:[%s4645_s3 + $0x310] sm:$0xff] }
  0xe8   :  { %2849 = vmatprep.subr.bf16.mxu1 %v2848_v17  ;;  %v316_v29 = vld [vmem:[#allocation2 + $0x19] sm:$0xff]  ;;  %289 = vst [vmem:[#allocation2 + $0x52] sm:$0xff] %v257_v25  ;;  %v3575_v33 = vadd.f32 %v2735_v28, %v3496_v53  ;;  %v211_v34 = vpop.f32.mrb[9].mxu0  ;;  %v317_v54 = vld [vmem:[#allocation2 + $0x21] sm:$0xff] }
  0xe9   :  { %288 = vst [vmem:[#allocation2 + $0x4a] sm:$0xff] %v256_v27  ;;  %v3586_v38 = vadd.f32 %v3496_v53, %v211_v34  ;;  %v300_v49 = vld [vmem:[#allocation2 + $0x18] sm:$0xff]  ;;  %v301_v13 = vld [vmem:[#allocation2 + $0x20] sm:$0xff] }
  0xea   :  { %621 = vmatmul.mubr.f32.gmra.mrb[2].mxu1 %v299_v35  ;;  %v259_v39 = vmax.f32 %v3575_v33, 0.0  ;;  %v474_v14 = vld [vmem:[%s4645_s3 + $0x300] sm:$0xff] }
  0xeb   :  { %2851 = vmatpush1.bf16.msra.mxu1 %v2850_v26  ;;  %626 = vmatprep.mubr.f32.mxu1 %v316_v29  ;;  %v258_v41 = vmax.f32 %v3586_v38, 0.0  ;;  %v2738_v43 = vpop.f32.mrb[10].mxu0  ;;  %v464_v26 = vld [vmem:[%s4645_s3 + $0x2b0] sm:$0xff] }
  0xec   :  { %2853 = vmatprep.subr.bf16.mxu1 %v2852_v30  ;;  %291 = vst [vmem:[#allocation2 + $0x6a] sm:$0xff] %v259_v39  ;;  %v3599_v47 = vadd.f32 %v2738_v43, %v3496_v53  ;;  %v221_v48 = vpop.f32.mrb[11].mxu0  ;;  %v318_v4 = vld [vmem:[#allocation2 + $0x31] sm:$0xff]  ;;  %v319_v35 = vld [vmem:[#allocation2 + $0x39] sm:$0xff]  ;;  %v2866_v37 = vpack.c.bf16 %v464_v26, %v462_v24  ;;  %v2878_v24 = vpack.c.bf16 %v476_v15, %v474_v14 }
  0xed   :  { %290 = vst [vmem:[#allocation2 + $0x62] sm:$0xff] %v258_v41  ;;  %v3610_v52 = vadd.f32 %v3496_v53, %v221_v48  ;;  %v302_v30 = vld [vmem:[#allocation2 + $0x30] sm:$0xff]  ;;  %v303_v46 = vld [vmem:[#allocation2 + $0x38] sm:$0xff]  ;;  %v471_v48 = vld [vmem:[%s4645_s3 + $0x2e8] sm:$0xff] }
  0xee   :  { %627 = vmatmul.mubr.f32.gmra.mrb[4].mxu1 %v300_v49  ;;  %v261_v56 = vmax.f32 %v3599_v47, 0.0  ;;  %v473_v49 = vld [vmem:[%s4645_s3 + $0x2f8] sm:$0xff]  ;;  %v490_v15 = vld [vmem:[%s4645_s3 + $0x380] sm:$0xff] }
  0xef   :  { %2855 = vmatpush1.bf16.msra.mxu1 %v2854_v40  ;;  %632 = vmatprep.mubr.f32.mxu1 %v317_v54  ;;  %v260_v62 = vmax.f32 %v3610_v52, 0.0  ;;  %v2741_v2 = vpop.f32.mrb[12].mxu0  ;;  %v2872_v51 = vpack.c.bf16 %v473_v49, %v471_v48  ;;  %v470_v54 = vld [vmem:[%s4645_s3 + $0x2e0] sm:$0xff]  ;;  %v487_v49 = vld [vmem:[%s4645_s3 + $0x368] sm:$0xff] }
  0xf0   :  { %2857 = vmatprep.subr.bf16.mxu1 %v2856_v44  ;;  %293 = vst [vmem:[#allocation2 + $0x82] sm:$0xff] %v261_v56  ;;  %v3623_v9 = vadd.f32 %v2741_v2, %v3496_v53  ;;  %v231_v11 = vpop.f32.mrb[13].mxu0  ;;  %v320_v43 = vld [vmem:[#allocation2 + $0x49] sm:$0xff]  ;;  %v2868_v44 = vpack.c.bf16 %v469_v32, %v467_v31  ;;  %v321_v6 = vld [vmem:[#allocation2 + $0x51] sm:$0xff]  ;;  %v364_v47 = vld [vmem:[#allocation2 + $0x1c] sm:$0xff] }
  0xf1   :  { %292 = vst [vmem:[#allocation2 + $0x7a] sm:$0xff] %v260_v62  ;;  %v3634_v16 = vadd.f32 %v3496_v53, %v231_v11  ;;  %v304_v2 = vld [vmem:[#allocation2 + $0x48] sm:$0xff] }
  0xf2   :  { %633 = vmatmul.mubr.f32.gmra.mrb[6].mxu1 %v301_v13  ;;  %v263_v17 = vmax.f32 %v3623_v9, 0.0  ;;  %v483_v32 = vld [vmem:[%s4645_s3 + $0x348] sm:$0xff] }
  0xf3   :  { %2859 = vmatpush1.bf16.msra.mxu1 %v2858_v60  ;;  %638 = vmatprep.mubr.f32.mxu1 %v318_v4  ;;  %v262_v20 = vmax.f32 %v3634_v16, 0.0  ;;  %v2744_v21 = vpop.f32.mrb[14].mxu0  ;;  %v472_v60 = vld [vmem:[%s4645_s3 + $0x2f0] sm:$0xff]  ;;  %v475_v4 = vld [vmem:[%s4645_s3 + $0x308] sm:$0xff] }
  0xf4   :  { %2861 = vmatprep.subr.bf16.mxu1 %v2860_v5  ;;  %295 = vst [vmem:[#allocation2 + $0x9a] sm:$0xff] %v263_v17  ;;  %v3647_v28 = vadd.f32 %v2744_v21, %v3496_v53  ;;  %v241_v29 = vpop.f32.mrb[15].mxu0  ;;  %v477_v5 = vld [vmem:[%s4645_s3 + $0x318] sm:$0xff]  ;;  %v2874_v8 = vpack.c.bf16 %v472_v60, %v470_v54  ;;  %v322_v11 = vld [vmem:[#allocation2 + $0x61] sm:$0xff]  ;;  %v368_v9 = vld [vmem:[#allocation2 + $0x4c] sm:$0xff] }
  0xf5   :  { %294 = vst [vmem:[#allocation2 + $0x92] sm:$0xff] %v262_v20  ;;  %v3658_v34 = vadd.f32 %v3496_v53, %v241_v29  ;;  %v468_v53 = vld [vmem:[%s4645_s3 + $0x2d0] sm:$0xff]  ;;  %v2876_v13 = vpack.c.bf16 %v477_v5, %v475_v4  ;;  %v479_v21 = vld [vmem:[%s4645_s3 + $0x328] sm:$0xff]  ;;  %v478_v29 = vld [vmem:[%s4645_s3 + $0x320] sm:$0xff] }
  0xf6   :  { %639 = vmatmul.mubr.f32.gmra.mrb[8].mxu1 %v302_v30  ;;  %v265_v36 = vmax.f32 %v3647_v28, 0.0  ;;  %v2870_v50 = vpack.c.bf16 %v468_v53, %v466_v45  ;;  %v480_v30 = vld [vmem:[%s4645_s3 + $0x330] sm:$0xff]  ;;  %v306_v31 = vld [vmem:[#allocation2 + $0x60] sm:$0xff]  ;;  %v307_v48 = vld [vmem:[#allocation2 + $0x68] sm:$0xff] }
  0xf7   :  { %2863 = vmatpush1.bf16.msra.mxu1 %v2862_v18  ;;  %644 = vmatprep.mubr.f32.mxu1 %v319_v35  ;;  %v264_v40 = vmax.f32 %v3658_v34, 0.0  ;;  %v305_v18 = vld [vmem:[#allocation2 + $0x50] sm:$0xff]  ;;  %v485_v35 = vld [vmem:[%s4645_s3 + $0x358] sm:$0xff]  ;;  %v482_v53 = vld [vmem:[%s4645_s3 + $0x340] sm:$0xff] }
  0xf8   :  { %2865 = vmatprep.subr.bf16.mxu1 %v2864_v22  ;;  %297 = vst [vmem:[#allocation2 + $0xb2] sm:$0xff] %v265_v36  ;;  %v481_v22 = vld [vmem:[%s4645_s3 + $0x338] sm:$0xff]  ;;  %v2884_v45 = vpack.c.bf16 %v485_v35, %v483_v32  ;;  %v486_v60 = vld [vmem:[%s4645_s3 + $0x360] sm:$0xff]  ;;  %v491_v5 = vld [vmem:[%s4645_s3 + $0x388] sm:$0xff] }
  0xf9   :  { %296 = vst [vmem:[#allocation2 + $0xaa] sm:$0xff] %v264_v40  ;;  %v2880_v26 = vpack.c.bf16 %v481_v22, %v479_v21  ;;  %v308_v4 = vld [vmem:[#allocation2 + $0x78] sm:$0xff]  ;;  %v309_v21 = vld [vmem:[#allocation2 + $0x80] sm:$0xff]  ;;  %v495_v22 = vld [vmem:[%s4645_s3 + $0x3a8] sm:$0xff] }
  0xfa   :  { %645 = vmatmul.mubr.f32.gmra.mrb[10].mxu1 %v303_v46  ;;  %v484_v46 = vld [vmem:[%s4645_s3 + $0x350] sm:$0xff]  ;;  %v499_v35 = vld [vmem:[%s4645_s3 + $0x3c8] sm:$0xff]  ;;  %v356_v23 = vld [vmem:[#allocation2 + $0x7b] sm:$0xff] }
  0xfb   :  { %2867 = vmatpush1.bf16.msra.mxu1 %v2866_v37  ;;  %650 = vmatprep.mubr.f32.mxu1 %v320_v43  ;;  %v323_v37 = vld [vmem:[#allocation2 + $0x69] sm:$0xff]  ;;  %v2882_v43 = vpack.c.bf16 %v480_v30, %v478_v29  ;;  %v494_v30 = vld [vmem:[%s4645_s3 + $0x3a0] sm:$0xff]  ;;  %v369_v16 = vld [vmem:[#allocation2 + $0x54] sm:$0xff] }
  0xfc   :  { %2869 = vmatprep.subr.bf16.mxu1 %v2868_v44  ;;  %v324_v44 = vld [vmem:[#allocation2 + $0x79] sm:$0xff]  ;;  %v310_v32 = vld [vmem:[#allocation2 + $0x90] sm:$0xff]  ;;  %v365_v52 = vld [vmem:[#allocation2 + $0x24] sm:$0xff] }
  0xfd   :  { %v358_v19 = vld [vmem:[#allocation2 + $0x93] sm:$0xff]  ;;  %v372_v28 = vld [vmem:[#allocation2 + $0x7c] sm:$0xff]  ;;  %v373_v34 = vld [vmem:[#allocation2 + $0x84] sm:$0xff] }
  0xfe   :  { %651 = vmatmul.mubr.f32.gmra.mrb[12].mxu1 %v304_v2  ;;  %v488_v2 = vld [vmem:[%s4645_s3 + $0x370] sm:$0xff] }
  0xff   :  { %2871 = vmatpush1.bf16.msra.mxu1 %v2870_v50  ;;  %656 = vmatprep.mubr.f32.mxu1 %v321_v6  ;;  %v489_v50 = vld [vmem:[%s4645_s3 + $0x378] sm:$0xff] }
 0x100   :  { %2873 = vmatprep.subr.bf16.mxu1 %v2872_v51  ;;  %v2886_v51 = vpack.c.bf16 %v484_v46, %v482_v53  ;;  %v2888_v54 = vpack.c.bf16 %v489_v50, %v487_v49  ;;  %v493_v6 = vld [vmem:[%s4645_s3 + $0x398] sm:$0xff]  ;;  %v498_v46 = vld [vmem:[%s4645_s3 + $0x3c0] sm:$0xff]  ;;  %v503_v50 = vld [vmem:[%s4645_s3 + $0x3e8] sm:$0xff] }
 0x101   :  { %v2892_v14 = vpack.c.bf16 %v493_v6, %v491_v5  ;;  %v311_v49 = vld [vmem:[#allocation2 + $0x98] sm:$0xff]  ;;  %v312_v5 = vld [vmem:[#allocation2 + $0xa8] sm:$0xff] }
 0x102   :  { %657 = vmatmul.mubr.f32.gmra.mrb[14].mxu1 %v305_v18  ;;  %v492_v18 = vld [vmem:[%s4645_s3 + $0x390] sm:$0xff]  ;;  %v507_v6 = vld [vmem:[%s4645_s3 + $0x408] sm:$0xff] }
 0x103   :  { %2875 = vmatpush1.bf16.msra.mxu1 %v2874_v8  ;;  %662 = vmatprep.mubr.f32.mxu1 %v322_v11  ;;  %v325_v8 = vld [vmem:[#allocation2 + $0x81] sm:$0xff]  ;;  %v2890_v11 = vpack.c.bf16 %v488_v2, %v486_v60  ;;  %v360_v33 = vld [vmem:[#allocation2 + $0xab] sm:$0xff]  ;;  %v361_v38 = vld [vmem:[#allocation2 + $0xb3] sm:$0xff] }
 0x104   :  { %2877 = vmatprep.subr.bf16.mxu1 %v2876_v13  ;;  %v326_v13 = vld [vmem:[#allocation2 + $0x91] sm:$0xff]  ;;  %v502_v2 = vld [vmem:[%s4645_s3 + $0x3e0] sm:$0xff] }
 0x106   :  { %663 = vmatmul.mubr.f32.gmra.mrb[16].mxu1 %v306_v31  ;;  %v496_v31 = vld [vmem:[%s4645_s3 + $0x3b0] sm:$0xff] }
 0x107   :  { %2879 = vmatpush1.bf16.msra.mxu1 %v2878_v24  ;;  %668 = vmatprep.mubr.f32.mxu1 %v323_v37  ;;  %v497_v24 = vld [vmem:[%s4645_s3 + $0x3b8] sm:$0xff] }
 0x108   :  { %2881 = vmatprep.subr.bf16.mxu1 %v2880_v26  ;;  %v2894_v26 = vpack.c.bf16 %v492_v18, %v490_v15  ;;  %v2896_v29 = vpack.c.bf16 %v497_v24, %v495_v22  ;;  %v501_v37 = vld [vmem:[%s4645_s3 + $0x3d8] sm:$0xff]  ;;  %v506_v15 = vld [vmem:[%s4645_s3 + $0x400] sm:$0xff]  ;;  %v508_v18 = vld [vmem:[%s4645_s3 + $0x410] sm:$0xff] }
 0x109   :  { %v2900_v53 = vpack.c.bf16 %v501_v37, %v499_v35  ;;  %v511_v22 = vld [vmem:[%s4645_s3 + $0x428] sm:$0xff]  ;;  %v513_v24 = vld [vmem:[%s4645_s3 + $0x438] sm:$0xff]  ;;  %v1711_v35 = vld [vmem:[%s4647_s5 + $0x80] sm:$0xff] }
 0x10a   :  { %669 = vmatmul.mubr.f32.gmra.mrb[18].mxu1 %v307_v48  ;;  %v500_v48 = vld [vmem:[%s4645_s3 + $0x3d0] sm:$0xff]  ;;  %v1712_v37 = vld [vmem:[%s4647_s5 + $0x88] sm:$0xff] }
 0x10b   :  { %2883 = vmatpush1.bf16.msra.mxu1 %v2882_v43  ;;  %674 = vmatprep.mubr.f32.mxu1 %v324_v44  ;;  %v327_v43 = vld [vmem:[#allocation2 + $0x99] sm:$0xff]  ;;  %v2898_v44 = vpack.c.bf16 %v496_v31, %v494_v30  ;;  %v512_v30 = vld [vmem:[%s4645_s3 + $0x430] sm:$0xff]  ;;  %v2910_v31 = vpack.c.bf16 %v508_v18, %v506_v15 }
 0x10c   :  { %2885 = vmatprep.subr.bf16.mxu1 %v2884_v45  ;;  %v328_v45 = vld [vmem:[#allocation2 + $0xa9] sm:$0xff]  ;;  %v1699_v18 = vld [vmem:[%s4647_s5 + $0x20] sm:$0xff] }
 0x10e   :  { %675 = vmatmul.mubr.f32.gmra.mrb[20].mxu1 %v308_v4  ;;  %v504_v4 = vld [vmem:[%s4645_s3 + $0x3f0] sm:$0xff] }
 0x10f   :  { %2887 = vmatpush1.bf16.msra.mxu1 %v2886_v51  ;;  %680 = vmatprep.mubr.f32.mxu1 %v325_v8  ;;  %v505_v51 = vld [vmem:[%s4645_s3 + $0x3f8] sm:$0xff] }
 0x110   :  { %2889 = vmatprep.subr.bf16.mxu1 %v2888_v54  ;;  %v2902_v54 = vpack.c.bf16 %v500_v48, %v498_v46  ;;  %v2904_v60 = vpack.c.bf16 %v505_v51, %v503_v50  ;;  %v509_v8 = vld [vmem:[%s4645_s3 + $0x418] sm:$0xff]  ;;  %v1713_v46 = vld [vmem:[%s4647_s5 + $0x90] sm:$0xff] }
 0x111   :  { %v1714_v48 = vld [vmem:[%s4647_s5 + $0x98] sm:$0xff] }
 0x112   :  { %681 = vmatmul.mubr.f32.gmra.mrb[22].mxu1 %v309_v21  ;;  %v313_v21 = vld [vmem:[#allocation2 + $0xb0] sm:$0xff]  ;;  %v2944_v51 = vpack.c.bf16 %v1714_v48, %v1713_v46  ;;  %v522_v48 = vld [vmem:[%s4645_s3 + $0x480] sm:$0xff] }
 0x113   :  { %2891 = vmatpush1.bf16.msra.mxu1 %v2890_v11  ;;  %686 = vmatprep.mubr.f32.mxu1 %v326_v13  ;;  %v329_v11 = vld [vmem:[#allocation2 + $0xb1] sm:$0xff]  ;;  %v2906_v13 = vpack.c.bf16 %v504_v4, %v502_v2  ;;  %v1715_v4 = vld [vmem:[%s4647_s5 + $0xa0] sm:$0xff] }
 0x114   :  { %2893 = vmatprep.subr.bf16.mxu1 %v2892_v14  ;;  %v2908_v14 = vpack.c.bf16 %v509_v8, %v507_v6  ;;  %v347_v2 = vld [vmem:[#allocation2 + $0xb] sm:$0xff] }
 0x116   :  { %687 = vmatmul.mubr.f32.gmra.mrb[24].mxu1 %v310_v32  ;;  %v515_v32 = vld [vmem:[%s4645_s3 + $0x448] sm:$0xff] }
 0x117   :  { %2895 = vmatpush1.bf16.msra.mxu1 %v2894_v26  ;;  %692 = vmatprep.mubr.f32.mxu1 %v327_v43  ;;  %v346_v26 = vld [vmem:[#allocation2 + $0x3] sm:$0xff] }
 0x118   :  { %2897 = vmatprep.subr.bf16.mxu1 %v2896_v29  ;;  %v510_v29 = vld [vmem:[%s4645_s3 + $0x420] sm:$0xff] }
 0x119   :  { %v1695_v43 = vld [vmem:[%s4647_s5] sm:$0xff]  ;;  %v2914_v6 = vpack.c.bf16 %v512_v30, %v510_v29 }
 0x11a   :  { %693 = vmatmul.mubr.f32.gmra.mrb[26].mxu1 %v311_v49  ;;  %v517_v49 = vld [vmem:[%s4645_s3 + $0x458] sm:$0xff] }
 0x11b   :  { %2899 = vmatpush1.bf16.msra.mxu1 %v2898_v44  ;;  %698 = vmatprep.mubr.f32.mxu1 %v328_v45  ;;  %v2912_v44 = vpack.c.bf16 %v513_v24, %v511_v22  ;;  %v2940_v45 = vpack.c.bf16 %v1712_v37, %v1711_v35  ;;  %v2916_v8 = vpack.c.bf16 %v517_v49, %v515_v32  ;;  %v348_v22 = vld [vmem:[#allocation2 + $0x1b] sm:$0xff]  ;;  %v1717_v24 = vld [vmem:[%s4647_s5 + $0xb0] sm:$0xff] }
 0x11c   :  { %2901 = vmatprep.subr.bf16.mxu1 %v2900_v53  ;;  %v1696_v53 = vld [vmem:[%s4647_s5 + $0x8] sm:$0xff]  ;;  %v525_v35 = vld [vmem:[%s4645_s3 + $0x498] sm:$0xff]  ;;  %v524_v49 = vld [vmem:[%s4645_s3 + $0x490] sm:$0xff] }
 0x11d   :  { %v2942_v50 = vpack.c.bf16 %v1696_v53, %v1695_v43  ;;  %2941 = vmatprep.subr.bf16.mxu0 %v2940_v45  ;;  %v1701_v43 = vld [vmem:[%s4647_s5 + $0x30] sm:$0xff]  ;;  %v349_v45 = vld [vmem:[#allocation2 + $0x23] sm:$0xff] }
 0x11e   :  { %699 = vmatmul.mubr.f32.gmra.mrb[28].mxu1 %v312_v5  ;;  %v1716_v5 = vld [vmem:[%s4647_s5 + $0xa8] sm:$0xff] }
 0x11f   :  { %2903 = vmatpush1.bf16.msra.mxu1 %v2902_v54  ;;  %704 = vmatprep.mubr.f32.mxu1 %v329_v11  ;;  %v1697_v54 = vld [vmem:[%s4647_s5 + $0x10] sm:$0xff]  ;;  %v519_v11 = vld [vmem:[%s4645_s3 + $0x468] sm:$0xff]  ;;  %v2948_v15 = vpack.c.bf16 %v1716_v5, %v1715_v4  ;;  %v351_v5 = vld [vmem:[#allocation2 + $0x3b] sm:$0xff] }
 0x120   :  { %2905 = vmatprep.subr.bf16.mxu1 %v2904_v60  ;;  %v1698_v60 = vld [vmem:[%s4647_s5 + $0x18] sm:$0xff]  ;;  %2943 = vmatpush3.bf16.msra.mxu0 %v2942_v50  ;;  %v528_v4 = vld [vmem:[%s4645_s3 + $0x4b0] sm:$0xff] }
 0x121   :  { %2945 = vmatprep.subr.bf16.mxu0 %v2944_v51  ;;  %v350_v51 = vld [vmem:[#allocation2 + $0x33] sm:$0xff] }
 0x122   :  { %705 = vmatmul.mubr.f32.gmra.mrb[30].mxu1 %v313_v21  ;;  %v1700_v21 = vld [vmem:[%s4647_s5 + $0x28] sm:$0xff] }
 0x123   :  { %2907 = vmatpush1.bf16.msra.mxu1 %v2906_v13  ;;  %775 = vmatprep.mubr.f32.mxu1 %v346_v26  ;;  %v2946_v13 = vpack.c.bf16 %v1698_v60, %v1697_v54  ;;  %v1718_v26 = vld [vmem:[%s4647_s5 + $0xb8] sm:$0xff]  ;;  %v2950_v32 = vpack.c.bf16 %v1700_v21, %v1699_v18  ;;  %v2926_v54 = vpack.c.bf16 %v524_v49, %v522_v48  ;;  %v536_v18 = vld [vmem:[%s4645_s3 + $0x4f0] sm:$0xff]  ;;  %v1723_v48 = vld [vmem:[%s4647_s5 + $0xe0] sm:$0xff] }
 0x124   :  { %2909 = vmatprep.subr.bf16.mxu1 %v2908_v14  ;;  %v521_v14 = vld [vmem:[%s4645_s3 + $0x478] sm:$0xff]  ;;  %v2952_v37 = vpack.c.bf16 %v1718_v26, %v1717_v24  ;;  %v376_v24 = vld [vmem:[#allocation2 + $0xac] sm:$0xff] }
 0x125   :  { %v2920_v30 = vpack.c.bf16 %v521_v14, %v519_v11  ;;  %2947 = vmatpush3.bf16.msra.mxu0 %v2946_v13  ;;  %v535_v11 = vld [vmem:[%s4645_s3 + $0x4e8] sm:$0xff]  ;;  %v353_v21 = vld [vmem:[#allocation2 + $0x53] sm:$0xff] }
 0x126   :  { %776 = vmatmul.mubr.f32.vlgmr.msra.gmra.mrb[0].mxu1 %v250_v59  ;;  %v516_v59 = vld [vmem:[%s4645_s3 + $0x450] sm:$0xff]  ;;  %2949 = vmatprep.subr.bf16.mxu0 %v2948_v15  ;;  %v2936_v14 = vpack.c.bf16 %v537_v7, %v535_v11  ;;  %v534_v15 = vld [vmem:[%s4645_s3 + $0x4e0] sm:$0xff]  ;;  %v1724_v49 = vld [vmem:[%s4647_s5 + $0xe8] sm:$0xff] }
 0x127   :  { %2911 = vmatpush1.bf16.msra.mxu1 %v2910_v31  ;;  %781 = vmatprep.mubr.f32.mxu1 %v347_v2  ;;  %v2918_v29 = vpack.c.bf16 %v516_v59, %v514_v57  ;;  %v518_v31 = vld [vmem:[%s4645_s3 + $0x460] sm:$0xff]  ;;  %v532_v59 = vld [vmem:[%s4645_s3 + $0x4d0] sm:$0xff]  ;;  %v2938_v3 = vpack.c.bf16 %v536_v18, %v534_v15 }
 0x128   :  { %2913 = vmatprep.subr.bf16.mxu1 %v2912_v44  ;;  %v1702_v44 = vld [vmem:[%s4647_s5 + $0x38] sm:$0xff]  ;;  %v2922_v53 = vpack.c.bf16 %v520_v55, %v518_v31  ;;  %v526_v2 = vld [vmem:[%s4645_s3 + $0x4a0] sm:$0xff] }
 0x129   :  { %2951 = vmatpush3.bf16.msra.mxu0 %v2950_v32  ;;  %v2954_v50 = vpack.c.bf16 %v1702_v44, %v1701_v43  ;;  %v530_v57 = vld [vmem:[%s4645_s3 + $0x4c0] sm:$0xff]  ;;  %v377_v26 = vld [vmem:[#allocation2 + $0xb4] sm:$0xff] }
 0x12a   :  { %782 = vmatmul.mubr.f32.gmra.mrb[2].mxu1 %v251_v58  ;;  %v523_v58 = vld [vmem:[%s4645_s3 + $0x488] sm:$0xff]  ;;  %2953 = vmatprep.subr.bf16.mxu0 %v2952_v37  ;;  %v2934_v13 = vpack.c.bf16 %v532_v59, %v530_v57  ;;  %v1703_v55 = vld [vmem:[%s4647_s5 + $0x40] sm:$0xff]  ;;  %v1722_v37 = vld [vmem:[%s4647_s5 + $0xd8] sm:$0xff] }
 0x12b   :  { %787 = vmatprep.mubr.f32.mxu1 %v348_v22  ;;  %2915 = vmatpush1.bf16.msra.mxu1 %v2914_v6  ;;  %v2924_v46 = vpack.c.bf16 %v525_v35, %v523_v58  ;;  %v2930_v6 = vpack.c.bf16 %v528_v4, %v526_v2  ;;  %v355_v22 = vld [vmem:[#allocation2 + $0x6b] sm:$0xff]  ;;  %v1726_v2 = vld [vmem:[%s4647_s5 + $0xf8] sm:$0xff]  ;;  %v538_v7 = vld [vmem:[%s4648_s4] sm:$0x3] }
 0x12c   :  { %2917 = vmatprep.subr.bf16.mxu1 %v2916_v8  ;;  %v1704_v58 = vld [vmem:[%s4647_s5 + $0x48] sm:$0xff]  ;;  %v1721_v35 = vld [vmem:[%s4647_s5 + $0xd0] sm:$0xff] }
 0x12d   :  { %2955 = vmatpush3.bf16.msra.mxu0 %v2954_v50  ;;  %v2958_v32 = vpack.c.bf16 %v1704_v58, %v1703_v55  ;;  %v2960_v43 = vpack.c.bf16 %v1722_v37, %v1721_v35  ;;  %v1705_v44 = vld [vmem:[%s4647_s5 + $0x50] sm:$0xff]  ;;  %v1747_v50 = vld [vmem:[%s4647_s5 + $0x1a0] sm:$0xff] }
 0x12e   :  { %788 = vmatmul.mubr.f32.gmra.mrb[4].mxu1 %v252_v1  ;;  %v529_v1 = vld [vmem:[%s4645_s3 + $0x4b8] sm:$0xff] }
 0x12f   :  { %793 = vmatprep.mubr.f32.mxu1 %v349_v45  ;;  %2919 = vmatpush1.bf16.msra.mxu1 %v2918_v29  ;;  %v2928_v60 = vpack.c.bf16 %v529_v1, %v527_v63  ;;  %v1719_v29 = vld [vmem:[%s4647_s5 + $0xc0] sm:$0xff]  ;;  %v1706_v45 = vld [vmem:[%s4647_s5 + $0x58] sm:$0xff]  ;;  %v2964_v63 = vpack.c.bf16 %v1724_v49, %v1723_v48 }
 0x130   :  { %2921 = vmatprep.subr.bf16.mxu1 %v2920_v30  ;;  %v1720_v30 = vld [vmem:[%s4647_s5 + $0xc8] sm:$0xff]  ;;  %v1707_v1 = vld [vmem:[%s4647_s5 + $0x60] sm:$0xff] }
 0x131   :  { %v2956_v31 = vpack.c.bf16 %v1720_v30, %v1719_v29  ;;  %v1746_v29 = vld [vmem:[%s4647_s5 + $0x198] sm:$0xff] }
 0x132   :  { %794 = vmatmul.mubr.f32.gmra.mrb[6].mxu1 %v253_v0  ;;  %v533_v0 = vld [vmem:[%s4645_s3 + $0x4d8] sm:$0xff] }
 0x133   :  { %799 = vmatprep.mubr.f32.mxu1 %v350_v51  ;;  %2923 = vmatpush1.bf16.msra.mxu1 %v2922_v53  ;;  %v2932_v8 = vpack.c.bf16 %v533_v0, %v531_v61  ;;  %v540_v53 = vlaneseq  ;;  %v1708_v51 = vld [vmem:[%s4647_s5 + $0x68] sm:$0xff]  ;;  %v1709_v61 = vld [vmem:[%s4647_s5 + $0x70] sm:$0xff]  ;;  %v1710_v0 = vld [vmem:[%s4647_s5 + $0x78] sm:$0xff] }
 0x134   :  { %2925 = vmatprep.subr.bf16.mxu1 %v2924_v46  ;;  %2957 = vmatprep.subr.bf16.mxu0 %v2956_v31  ;;  %v2962_v46 = vpack.c.bf16 %v1706_v45, %v1705_v44  ;;  %v1729_v45 = vld [vmem:[%s4647_s5 + $0x110] sm:$0xff] }
 0x135   :  { %2959 = vmatpush3.bf16.msra.mxu0 %v2958_v32  ;;  %vm4002_vm1 = vcmp.lt.s32.totalorder %v540_v53, 256  ;;  %v541_v59 = vshrl.u32 %v540_v53, 7  ;;  %v1730_v53 = vld [vmem:[%s4647_s5 + $0x118] sm:$0xff] }
 0x136   :  { %800 = vmatmul.mubr.f32.gmra.mrb[8].mxu1 %v254_v12  ;;  %v352_v12 = vld [vmem:[#allocation2 + $0x4b] sm:$0xff]  ;;  %2961 = vmatprep.subr.bf16.mxu0 %v2960_v43  ;;  %1069 = vst.msk [vmem:[#allocation3] ss:$8 sm:$0x3] %vm4002_vm1, %v3159_v42 }
 0x137   :  { %805 = vmatprep.mubr.f32.mxu1 %v351_v5  ;;  %2927 = vmatpush1.bf16.msra.mxu1 %v2926_v54  ;;  %1072 = vst.msk [vmem:[#allocation3 + $0x30] ss:$8 sm:$0x3] %vm4002_vm1, %v3159_v42  ;;  %1075 = vst.msk [vmem:[#allocation3 + $0x60] ss:$8 sm:$0x3] %vm4002_vm1, %v3159_v42  ;;  %v2966_v54 = vpack.c.bf16 %v1708_v51, %v1707_v1  ;;  %v2970_v5 = vpack.c.bf16 %v1710_v0, %v1709_v61 }
 0x138   :  { %2929 = vmatprep.subr.bf16.mxu1 %v2928_v60  ;;  %1078 = vst.msk [vmem:[#allocation3 + $0x90] ss:$8 sm:$0x3] %vm4002_vm1, %v3159_v42  ;;  %1081 = vst.msk [vmem:[#allocation3 + $0xc0] ss:$8 sm:$0x3] %vm4002_vm1, %v3159_v42 }
 0x139   :  { %2963 = vmatpush3.bf16.msra.mxu0 %v2962_v46  ;;  %1084 = vst.msk [vmem:[#allocation3 + $0xf0] ss:$8 sm:$0x3] %vm4002_vm1, %v3159_v42  ;;  %1087 = vst.msk [vmem:[#allocation3 + $0x120] ss:$8 sm:$0x3] %vm4002_vm1, %v3159_v42 }
 0x13a   :  { %806 = vmatmul.mubr.f32.gmra.mrb[10].mxu1 %v255_v10  ;;  %v354_v10 = vld [vmem:[#allocation2 + $0x63] sm:$0xff]  ;;  %1090 = vst.msk [vmem:[#allocation3 + $0x150] ss:$8 sm:$0x3] %vm4002_vm1, %v3159_v42  ;;  %2965 = vmatprep.subr.bf16.mxu0 %v2964_v63  ;;  %v1725_v60 = vld [vmem:[%s4647_s5 + $0xf0] sm:$0xff]  ;;  %v542_v11 = vsub.s32 0, %v541_v59 }
 0x13b   :  { %811 = vmatprep.mubr.f32.mxu1 %v352_v12  ;;  %2931 = vmatpush1.bf16.msra.mxu1 %v2930_v6  ;;  %1093 = vst.msk [vmem:[#allocation3 + $0x21] ss:$8 sm:$0x3] %vm4002_vm1, %v3159_v42  ;;  %1096 = vst.msk [vmem:[#allocation3 + $0x51] ss:$8 sm:$0x3] %vm4002_vm1, %v3159_v42  ;;  %v2968_v4 = vpack.c.bf16 %v1726_v2, %v1725_v60 }
 0x13c   :  { %2933 = vmatprep.subr.bf16.mxu1 %v2932_v8  ;;  %1099 = vst.msk [vmem:[#allocation3 + $0x81] ss:$8 sm:$0x3] %vm4002_vm1, %v3159_v42  ;;  %1102 = vst.msk [vmem:[#allocation3 + $0xb1] ss:$8 sm:$0x3] %vm4002_vm1, %v3159_v42 }
 0x13d   :  { %1105 = vst.msk [vmem:[#allocation3 + $0xe1] ss:$8 sm:$0x3] %vm4002_vm1, %v3159_v42  ;;  %1108 = vst.msk [vmem:[#allocation3 + $0x111] ss:$8 sm:$0x3] %vm4002_vm1, %v3159_v42  ;;  %2967 = vmatpush3.bf16.msra.mxu0 %v2966_v54 }
 0x13e   :  { %812 = vmatmul.mubr.f32.gmra.mrb[12].mxu1 %v256_v27  ;;  %v357_v27 = vld [vmem:[#allocation2 + $0x83] sm:$0xff]  ;;  %1111 = vst.msk [vmem:[#allocation3 + $0x141] ss:$8 sm:$0x3] %vm4002_vm1, %v3159_v42  ;;  %2969 = vmatprep.subr.bf16.mxu0 %v2968_v4  ;;  %v546_v12 = vsub.s32 1, %v541_v59  ;;  %v2978_v4 = vpack.c.bf16 %v1730_v53, %v1729_v45 }
 0x13f   :  { %817 = vmatprep.mubr.f32.mxu1 %v353_v21  ;;  %2935 = vmatpush1.bf16.msra.mxu1 %v2934_v13  ;;  %1114 = vst.msk [vmem:[#allocation3 + $0x171] ss:$8 sm:$0x3] %vm4002_vm1, %v3159_v42  ;;  %v1743_v6 = vld [vmem:[%s4647_s5 + $0x180] sm:$0xff]  ;;  %v1744_v8 = vld [vmem:[%s4647_s5 + $0x188] sm:$0xff]  ;;  %v4081_v13 = vrot.slane %v538_v7, %v542_v11 }
 0x140   :  { %2937 = vmatprep.subr.bf16.mxu1 %v2936_v14  ;;  %v2972_v57 = vpack.c.bf16 %v1744_v8, %v1743_v6  ;;  %v4083_v14 = vrot.slane %v538_v7, %v546_v12  ;;  %v1748_v63 = vld [vmem:[%s4647_s5 + $0x1a8] sm:$0xff]  ;;  %v1731_v6 = vld [vmem:[%s4647_s5 + $0x120] sm:$0xff]  ;;  %v1749_v7 = vld [vmem:[%s4647_s5 + $0x1b0] sm:$0xff] }
 0x141   :  { %2971 = vmatpush3.bf16.msra.mxu0 %v2970_v5  ;;  %v2980_v5 = vpack.c.bf16 %v1748_v63, %v1747_v50  ;;  %v1732_v8 = vld [vmem:[%s4647_s5 + $0x128] sm:$0xff]  ;;  %v1750_v12 = vld [vmem:[%s4647_s5 + $0x1b8] sm:$0xff]  ;;  %v1737_v50 = vld [vmem:[%s4647_s5 + $0x150] sm:$0xff] }
 0x142   :  { %818 = vmatmul.mubr.f32.gmra.mrb[14].mxu1 %v257_v25  ;;  %v359_v25 = vld [vmem:[#allocation2 + $0x9b] sm:$0xff]  ;;  %2973 = vmatprep.subr.bf16.mxu0 %v2972_v57 }
 0x143   :  { %823 = vmatprep.mubr.f32.mxu1 %v354_v10  ;;  %2939 = vmatpush1.bf16.msra.mxu1 %v2938_v3  ;;  %v1738_v63 = vld [vmem:[%s4647_s5 + $0x158] sm:$0xff] }
 0x146   :  { %824 = vmatmul.mubr.f32.gmra.mrb[16].mxu1 %v258_v41  ;;  %v363_v41 = vld [vmem:[#allocation2 + $0xc] sm:$0xff] }
 0x147   :  { %829 = vmatprep.mubr.f32.mxu1 %v355_v22 }
 0x14a   :  { %830 = vmatmul.mubr.f32.gmra.mrb[18].mxu1 %v259_v39  ;;  %v362_v39 = vld [vmem:[#allocation2 + $0x4] sm:$0xff] }
 0x14b   :  { %835 = vmatprep.mubr.f32.mxu1 %v356_v23 }
 0x14e   :  { %836 = vmatmul.mubr.f32.gmra.mrb[20].mxu1 %v260_v62  ;;  %v367_v62 = vld [vmem:[#allocation2 + $0x3c] sm:$0xff] }
 0x14f   :  { %841 = vmatprep.mubr.f32.mxu1 %v357_v27 }
 0x152   :  { %842 = vmatmul.mubr.f32.gmra.mrb[22].mxu1 %v261_v56  ;;  %v366_v56 = vld [vmem:[#allocation2 + $0x34] sm:$0xff] }
 0x153   :  { %847 = vmatprep.mubr.f32.mxu1 %v358_v19 }
 0x156   :  { %848 = vmatmul.mubr.f32.gmra.mrb[24].mxu1 %v262_v20  ;;  %v371_v20 = vld [vmem:[#allocation2 + $0x6c] sm:$0xff] }
 0x157   :  { %853 = vmatprep.mubr.f32.mxu1 %v359_v25 }
 0x15a   :  { %854 = vmatmul.mubr.f32.gmra.mrb[26].mxu1 %v263_v17  ;;  %v370_v17 = vld [vmem:[#allocation2 + $0x64] sm:$0xff] }
 0x15b   :  { %859 = vmatprep.mubr.f32.mxu1 %v360_v33 }
 0x15e   :  { %860 = vmatmul.mubr.f32.gmra.mrb[28].mxu1 %v264_v40  ;;  %v375_v40 = vld [vmem:[#allocation2 + $0x9c] sm:$0xff] }
 0x15f   :  { %865 = vmatprep.mubr.f32.mxu1 %v361_v38 }
 0x162   :  { %866 = vmatmul.mubr.f32.gmra.mrb[30].mxu1 %v265_v36  ;;  %v374_v36 = vld [vmem:[#allocation2 + $0x94] sm:$0xff] }
 0x163   :  { %936 = vmatprep.mubr.f32.mxu1 %v3159_v42 }
 0x166   :  { %937 = vmatmul.mubr.f32.vlgmr.msra.gmra.mrb[0].mxu1 %v362_v39 }
 0x167   :  { %942 = vmatprep.mubr.f32.mxu1 %v3159_v42 }
 0x16a   :  { %943 = vmatmul.mubr.f32.gmra.mrb[2].mxu1 %v363_v41 }
 0x16b   :  { %948 = vmatprep.mubr.f32.mxu1 %v3159_v42 }
 0x16e   :  { %949 = vmatmul.mubr.f32.gmra.mrb[4].mxu1 %v364_v47 }
 0x16f   :  { %954 = vmatprep.mubr.f32.mxu1 %v3159_v42 }
 0x172   :  { %955 = vmatmul.mubr.f32.gmra.mrb[6].mxu1 %v365_v52 }
 0x173   :  { %960 = vmatprep.mubr.f32.mxu1 %v3159_v42 }
 0x176   :  { %961 = vmatmul.mubr.f32.gmra.mrb[8].mxu1 %v366_v56 }
 0x177   :  { %966 = vmatprep.mubr.f32.mxu1 %v3159_v42 }
 0x17a   :  { %967 = vmatmul.mubr.f32.gmra.mrb[10].mxu1 %v367_v62 }
 0x17b   :  { %972 = vmatprep.mubr.f32.mxu1 %v3159_v42 }
 0x17e   :  { %973 = vmatmul.mubr.f32.gmra.mrb[12].mxu1 %v368_v9 }
 0x17f   :  { %978 = vmatprep.mubr.f32.mxu1 %v3159_v42 }
 0x182   :  { %979 = vmatmul.mubr.f32.gmra.mrb[14].mxu1 %v369_v16 }
 0x183   :  { %984 = vmatprep.mubr.f32.mxu1 %v3159_v42 }
 0x186   :  { %985 = vmatmul.mubr.f32.gmra.mrb[16].mxu1 %v370_v17 }
 0x187   :  { %990 = vmatprep.mubr.f32.mxu1 %v3159_v42 }
 0x18a   :  { %991 = vmatmul.mubr.f32.gmra.mrb[18].mxu1 %v371_v20 }
 0x18b   :  { %996 = vmatprep.mubr.f32.mxu1 %v3159_v42 }
 0x18e   :  { %997 = vmatmul.mubr.f32.gmra.mrb[20].mxu1 %v372_v28  ;;  %v1727_v28 = vld [vmem:[%s4647_s5 + $0x100] sm:$0xff] }
 0x18f   :  { %1002 = vmatprep.mubr.f32.mxu1 %v3159_v42 }
 0x192   :  { %1003 = vmatmul.mubr.f32.gmra.mrb[22].mxu1 %v373_v34  ;;  %v1728_v34 = vld [vmem:[%s4647_s5 + $0x108] sm:$0xff] }
 0x193   :  { %1008 = vmatprep.mubr.f32.mxu1 %v3159_v42  ;;  %v2974_v35 = vpack.c.bf16 %v1728_v34, %v1727_v28 }
 0x196   :  { %1009 = vmatmul.mubr.f32.gmra.mrb[24].mxu1 %v374_v36 }
 0x197   :  { %1014 = vmatprep.mubr.f32.mxu1 %v3159_v42 }
 0x19a   :  { %1015 = vmatmul.mubr.f32.gmra.mrb[26].mxu1 %v375_v40 }
 0x19b   :  { %1020 = vmatprep.mubr.f32.mxu1 %v3159_v42 }
 0x19e   :  { %1021 = vmatmul.mubr.f32.gmra.mrb[28].mxu1 %v376_v24 }
 0x19f   :  { %1026 = vmatprep.mubr.f32.mxu1 %v3159_v42 }
 0x1a2   :  { %1027 = vmatmul.mubr.f32.gmra.mrb[30].mxu1 %v377_v26  ;;  %v1745_v26 = vld [vmem:[%s4647_s5 + $0x190] sm:$0xff] }
 0x1a3   :  { %v2976_v44 = vpack.c.bf16 %v1746_v29, %v1745_v26  ;;  %v1735_v26 = vld [vmem:[%s4647_s5 + $0x140] sm:$0xff]  ;;  %v1736_v29 = vld [vmem:[%s4647_s5 + $0x148] sm:$0xff] }
 0x1a4   :  { %v2990_v53 = vpack.c.bf16 %v1736_v29, %v1735_v26 }
 0x239   :  { %v938_v15 = vpop.f32.mrb[0].mxu1 }
 0x23a   :  { %v3060_v18 = vadd.f32 %v938_v15, %v4081_v13  ;;  %v940_v21 = vpop.f32.mrb[1].mxu1 }
 0x23b   :  { %v3061_v3 = vadd.f32 %v940_v21, %v4083_v14 }
 0x23c   :  { %v1033_v10 = vmax.f32 %v3060_v18, 0.0 }
 0x23d   :  { %v1034_v22 = vmax.f32 %v3061_v3, 0.0  ;;  %v944_v23 = vpop.f32.mrb[2].mxu1 }
 0x23e   :  { %v1149_v27 = vrot.slane %v1033_v10, 7  ;;  %v3062_v19 = vadd.f32 %v944_v23, %v4081_v13  ;;  %v946_v25 = vpop.f32.mrb[3].mxu1 }
 0x23f   :  { %v1150_v33 = vrot.slane %v1034_v22, 7  ;;  %v3063_v38 = vadd.f32 %v946_v25, %v4083_v14  ;;  %v2982_v22 = vpack.c.bf16 %v1732_v8, %v1731_v6  ;;  %v1733_v25 = vld [vmem:[%s4647_s5 + $0x130] sm:$0xff] }
 0x240   :  { %1245 = vst [vmem:[#allocation3] sm:$0xfe] %v1149_v27  ;;  %v1035_v39 = vmax.f32 %v3062_v19, 0.0  ;;  %v2984_v19 = vpack.c.bf16 %v1750_v12, %v1749_v7 }
 0x241   :  { %1246 = vst [vmem:[#allocation3 + $0x8] sm:$0xfe] %v1150_v33  ;;  %v1036_v41 = vmax.f32 %v3063_v38, 0.0  ;;  %v950_v47 = vpop.f32.mrb[4].mxu1 }
 0x242   :  { %v1151_v52 = vrot.slane %v1035_v39, 7  ;;  %v3064_v56 = vadd.f32 %v950_v47, %v4081_v13  ;;  %v952_v62 = vpop.f32.mrb[5].mxu1  ;;  %v1751_v47 = vld [vmem:[%s4647_s5 + $0x1c0] sm:$0xff] }
 0x243   :  { %v1153_v9 = vrot.slane %v1036_v41, 7  ;;  %v3065_v16 = vadd.f32 %v952_v62, %v4083_v14 }
 0x244   :  { %v4092_v17 = vsel %vm1148_vm2, %v1149_v27, %v1151_v52  ;;  %1249 = vst [vmem:[#allocation3 + $0x20] sm:$0x1] %v1151_v52  ;;  %v1037_v20 = vmax.f32 %v3064_v56, 0.0  ;;  %v1752_v52 = vld [vmem:[%s4647_s5 + $0x1c8] sm:$0xff] }
 0x245   :  { %v4101_v36 = vsel %vm1148_vm2, %v1150_v33, %v1153_v9  ;;  %1250 = vst [vmem:[#allocation3 + $0x28] sm:$0x1] %v1153_v9  ;;  %v1038_v40 = vmax.f32 %v3065_v16, 0.0  ;;  %v956_v24 = vpop.f32.mrb[6].mxu1  ;;  %v1734_v33 = vld [vmem:[%s4647_s5 + $0x138] sm:$0xff] }
 0x246   :  { %v1155_v30 = vrot.slane %v1037_v20, 7  ;;  %v3066_v31 = vadd.f32 %v956_v24, %v4081_v13  ;;  %v958_v55 = vpop.f32.mrb[7].mxu1  ;;  %v2986_v28 = vpack.c.bf16 %v1734_v33, %v1733_v25  ;;  %v2988_v24 = vpack.c.bf16 %v1752_v52, %v1751_v47 }
 0x247   :  { %v1156_v58 = vrot.slane %v1038_v40, 7  ;;  %v3067_v32 = vadd.f32 %v958_v55, %v4083_v14  ;;  %v1293_v49 = vld [vmem:[#allocation3] sm:$0xff] }
 0x248   :  { %1251 = vst [vmem:[#allocation3 + $0x30] sm:$0xfe] %v1155_v30  ;;  %v1039_v37 = vmax.f32 %v3066_v31, 0.0  ;;  %v1294_v43 = vld [vmem:[#allocation3 + $0x8] sm:$0xff] }
 0x249   :  { %1252 = vst [vmem:[#allocation3 + $0x38] sm:$0xfe] %v1156_v58  ;;  %v1040_v46 = vmax.f32 %v3067_v32, 0.0  ;;  %v962_v48 = vpop.f32.mrb[8].mxu1  ;;  %1862 = vmatprep.mubr.f32.mxu0 %v1294_v43  ;;  %v1754_v32 = vld [vmem:[%s4647_s5 + $0x1d8] sm:$0xff] }
 0x24a   :  { %v1157_v1 = vrot.slane %v1039_v37, 7  ;;  %v3068_v51 = vadd.f32 %v962_v48, %v4081_v13  ;;  %v964_v54 = vpop.f32.mrb[9].mxu1  ;;  %1863 = vmatmul.mubr.f32.vlgmr.msra.gmra.mrb[16].mxu0 %v1293_v49 }
 0x24b   :  { %v1159_v60 = vrot.slane %v1040_v46, 7  ;;  %v3069_v2 = vadd.f32 %v964_v54, %v4083_v14  ;;  %2975 = vmatpush3.bf16.msra.mxu0 %v2974_v35  ;;  %1867 = vmatprep.mubr.f32.mxu0 %v4101_v36 }
 0x24c   :  { %v4127_v61 = vsel %vm1148_vm2, %v1155_v30, %v1157_v1  ;;  %1255 = vst [vmem:[#allocation3 + $0x50] sm:$0x1] %v1157_v1  ;;  %v1041_v0 = vmax.f32 %v3068_v51, 0.0  ;;  %2977 = vmatprep.subr.bf16.mxu0 %v2976_v44 }
 0x24d   :  { %v4136_v57 = vsel %vm1148_vm2, %v1156_v58, %v1159_v60  ;;  %1256 = vst [vmem:[#allocation3 + $0x58] sm:$0x1] %v1159_v60  ;;  %v1042_v59 = vmax.f32 %v3069_v2, 0.0  ;;  %v968_v11 = vpop.f32.mrb[10].mxu1  ;;  %v1753_v58 = vld [vmem:[%s4647_s5 + $0x1d0] sm:$0xff]  ;;  %v1755_v60 = vld [vmem:[%s4647_s5 + $0x1e0] sm:$0xff] }
 0x24e   :  { %v1161_v15 = vrot.slane %v1041_v0, 7  ;;  %v3070_v18 = vadd.f32 %v968_v11, %v4081_v13  ;;  %v970_v21 = vpop.f32.mrb[11].mxu1  ;;  %1868 = vmatmul.mubr.f32.gmra.mrb[18].mxu0 %v4092_v17  ;;  %v2992_v49 = vpack.c.bf16 %v1754_v32, %v1753_v58  ;;  %v1756_v2 = vld [vmem:[%s4647_s5 + $0x1e8] sm:$0xff] }
 0x24f   :  { %v1162_v3 = vrot.slane %v1042_v59, 7  ;;  %v3071_v10 = vadd.f32 %v970_v21, %v4083_v14  ;;  %2979 = vmatpush3.bf16.msra.mxu0 %v2978_v4  ;;  %v1297_v41 = vld [vmem:[#allocation3 + $0x30] sm:$0xff]  ;;  %v2994_v59 = vpack.c.bf16 %v1738_v63, %v1737_v50  ;;  %v2996_v12 = vpack.c.bf16 %v1756_v2, %v1755_v60 }
 0x250   :  { %1257 = vst [vmem:[#allocation3 + $0x60] sm:$0xfe] %v1161_v15  ;;  %v1043_v23 = vmax.f32 %v3070_v18, 0.0  ;;  %v1298_v27 = vld [vmem:[#allocation3 + $0x38] sm:$0xff]  ;;  %2981 = vmatprep.subr.bf16.mxu0 %v2980_v5  ;;  %v1740_v18 = vld [vmem:[%s4647_s5 + $0x168] sm:$0xff] }
 0x251   :  { %1258 = vst [vmem:[#allocation3 + $0x68] sm:$0xfe] %v1162_v3  ;;  %v1044_v38 = vmax.f32 %v3071_v10, 0.0  ;;  %v974_v39 = vpop.f32.mrb[12].mxu1  ;;  %1872 = vmatprep.mubr.f32.mxu0 %v1298_v27 }
 0x252   :  { %v1163_v56 = vrot.slane %v1043_v23, 7  ;;  %v3072_v62 = vadd.f32 %v974_v39, %v4081_v13  ;;  %v976_v9 = vpop.f32.mrb[13].mxu1  ;;  %1873 = vmatmul.mubr.f32.gmra.mrb[20].mxu0 %v1297_v41  ;;  %v1758_v23 = vld [vmem:[%s4647_s5 + $0x1f8] sm:$0xff] }
 0x253   :  { %v1165_v16 = vrot.slane %v1044_v38, 7  ;;  %v3073_v20 = vadd.f32 %v976_v9, %v4083_v14  ;;  %1877 = vmatprep.mubr.f32.mxu0 %v4136_v57  ;;  %2983 = vmatpush3.bf16.msra.mxu0 %v2982_v22  ;;  %v1757_v22 = vld [vmem:[%s4647_s5 + $0x1f0] sm:$0xff] }
 0x254   :  { %v4163_v34 = vsel %vm1148_vm2, %v1161_v15, %v1163_v56  ;;  %1261 = vst [vmem:[#allocation3 + $0x80] sm:$0x1] %v1163_v56  ;;  %v1045_v40 = vmax.f32 %v3072_v62, 0.0  ;;  %2985 = vmatprep.subr.bf16.mxu0 %v2984_v19  ;;  %v1739_v15 = vld [vmem:[%s4647_s5 + $0x160] sm:$0xff]  ;;  %v3000_v52 = vpack.c.bf16 %v1758_v23, %v1757_v22  ;;  %v1741_v56 = vld [vmem:[%s4647_s5 + $0x170] sm:$0xff]  ;;  %v1742_v62 = vld [vmem:[%s4647_s5 + $0x178] sm:$0xff] }
 0x255   :  { %v4172_v30 = vsel %vm1148_vm2, %v1162_v3, %v1165_v16  ;;  %1262 = vst [vmem:[#allocation3 + $0x88] sm:$0x1] %v1165_v16  ;;  %v1046_v31 = vmax.f32 %v3073_v20, 0.0  ;;  %v980_v55 = vpop.f32.mrb[14].mxu1  ;;  %v2998_v39 = vpack.c.bf16 %v1740_v18, %v1739_v15  ;;  %v3002_v58 = vpack.c.bf16 %v1742_v62, %v1741_v56 }
 0x256   :  { %v1167_v35 = vrot.slane %v1045_v40, 7  ;;  %v3074_v37 = vadd.f32 %v980_v55, %v4081_v13  ;;  %v982_v43 = vpop.f32.mrb[15].mxu1  ;;  %1878 = vmatmul.mubr.f32.gmra.mrb[22].mxu0 %v4127_v61  ;;  %v1776_v40 = vld [vmem:[%s4647_s5 + $0x288] sm:$0xff] }
 0x257   :  { %v1168_v44 = vrot.slane %v1046_v31, 7  ;;  %v3075_v45 = vadd.f32 %v982_v43, %v4083_v14  ;;  %2987 = vmatpush3.bf16.msra.mxu0 %v2986_v28  ;;  %v1301_v54 = vld [vmem:[#allocation3 + $0x60] sm:$0xff] }
 0x258   :  { %1263 = vst [vmem:[#allocation3 + $0x90] sm:$0xfe] %v1167_v35  ;;  %v1047_v46 = vmax.f32 %v3074_v37, 0.0  ;;  %v1302_v48 = vld [vmem:[#allocation3 + $0x68] sm:$0xff]  ;;  %2989 = vmatprep.subr.bf16.mxu0 %v2988_v24  ;;  %v1775_v28 = vld [vmem:[%s4647_s5 + $0x280] sm:$0xff] }
 0x259   :  { %1264 = vst [vmem:[#allocation3 + $0x98] sm:$0xfe] %v1168_v44  ;;  %v1048_v1 = vmax.f32 %v3075_v45, 0.0  ;;  %v986_v51 = vpop.f32.mrb[16].mxu1  ;;  %1882 = vmatprep.mubr.f32.mxu0 %v1302_v48  ;;  %v3004_v37 = vpack.c.bf16 %v1776_v40, %v1775_v28 }
 0x25a   :  { %v1169_v4 = vrot.slane %v1047_v46, 7  ;;  %v3076_v0 = vadd.f32 %v986_v51, %v4081_v13  ;;  %v988_v5 = vpop.f32.mrb[17].mxu1  ;;  %1883 = vmatmul.mubr.f32.gmra.mrb[24].mxu0 %v1301_v54 }
 0x25b   :  { %v1171_v6 = vrot.slane %v1048_v1, 7  ;;  %v3077_v8 = vadd.f32 %v988_v5, %v4083_v14  ;;  %1887 = vmatprep.mubr.f32.mxu0 %v4172_v30  ;;  %2991 = vmatpush3.bf16.msra.mxu0 %v2990_v53 }
 0x25c   :  { %v4199_v11 = vsel %vm1148_vm2, %v1167_v35, %v1169_v4  ;;  %1267 = vst [vmem:[#allocation3 + $0xb0] sm:$0x1] %v1169_v4  ;;  %v1049_v7 = vmax.f32 %v3076_v0, 0.0  ;;  %2993 = vmatprep.subr.bf16.mxu0 %v2992_v49 }
 0x25d   :  { %v4208_v21 = vsel %vm1148_vm2, %v1168_v44, %v1171_v6  ;;  %1268 = vst [vmem:[#allocation3 + $0xb8] sm:$0x1] %v1171_v6  ;;  %v1050_v3 = vmax.f32 %v3077_v8, 0.0  ;;  %v992_v10 = vpop.f32.mrb[18].mxu1 }
 0x25e   :  { %v1173_v27 = vrot.slane %v1049_v7, 7  ;;  %v3078_v19 = vadd.f32 %v992_v10, %v4081_v13  ;;  %v994_v25 = vpop.f32.mrb[19].mxu1  ;;  %1888 = vmatmul.mubr.f32.gmra.mrb[26].mxu0 %v4163_v34 }
 0x25f   :  { %v1174_v33 = vrot.slane %v1050_v3, 7  ;;  %v3079_v38 = vadd.f32 %v994_v25, %v4083_v14  ;;  %2995 = vmatpush3.bf16.msra.mxu0 %v2994_v59  ;;  %v1305_v20 = vld [vmem:[#allocation3 + $0x90] sm:$0xff] }
 0x260   :  { %1269 = vst [vmem:[#allocation3 + $0xc0] sm:$0xfe] %v1173_v27  ;;  %v1051_v41 = vmax.f32 %v3078_v19, 0.0  ;;  %v1306_v47 = vld [vmem:[#allocation3 + $0x98] sm:$0xff]  ;;  %2997 = vmatprep.subr.bf16.mxu0 %v2996_v12 }
 0x261   :  { %1270 = vst [vmem:[#allocation3 + $0xc8] sm:$0xfe] %v1174_v33  ;;  %v1052_v9 = vmax.f32 %v3079_v38, 0.0  ;;  %v998_v16 = vpop.f32.mrb[20].mxu1  ;;  %1892 = vmatprep.mubr.f32.mxu0 %v1306_v47 }
 0x262   :  { %v1175_v24 = vrot.slane %v1051_v41, 7  ;;  %v3080_v26 = vadd.f32 %v998_v16, %v4081_v13  ;;  %v1000_v29 = vpop.f32.mrb[21].mxu1  ;;  %1893 = vmatmul.mubr.f32.gmra.mrb[28].mxu0 %v1305_v20 }
 0x263   :  { %v1177_v31 = vrot.slane %v1052_v9, 7  ;;  %v3081_v55 = vadd.f32 %v1000_v29, %v4083_v14  ;;  %1897 = vmatprep.mubr.f32.mxu0 %v4208_v21  ;;  %2999 = vmatpush3.bf16.msra.mxu0 %v2998_v39 }
 0x264   :  { %v4235_v32 = vsel %vm1148_vm2, %v1173_v27, %v1175_v24  ;;  %1273 = vst [vmem:[#allocation3 + $0xe0] sm:$0x1] %v1175_v24  ;;  %v1053_v35 = vmax.f32 %v3080_v26, 0.0  ;;  %3001 = vmatprep.subr.bf16.mxu0 %v3000_v52 }
 0x265   :  { %v4238_v43 = vsel %vm1148_vm2, %v1174_v33, %v1177_v31  ;;  %1274 = vst [vmem:[#allocation3 + $0xe8] sm:$0x1] %v1177_v31  ;;  %v1054_v44 = vmax.f32 %v3081_v55, 0.0  ;;  %v1004_v45 = vpop.f32.mrb[22].mxu1 }
 0x266   :  { %v1179_v53 = vrot.slane %v1053_v35, 7  ;;  %v3082_v46 = vadd.f32 %v1004_v45, %v4081_v13  ;;  %v1006_v48 = vpop.f32.mrb[23].mxu1  ;;  %1898 = vmatmul.mubr.f32.gmra.mrb[30].mxu0 %v4199_v11 }
 0x267   :  { %v1180_v49 = vrot.slane %v1054_v44, 7  ;;  %v3083_v50 = vadd.f32 %v1006_v48, %v4083_v14  ;;  %3003 = vmatpush3.bf16.msra.mxu0 %v3002_v58  ;;  %v1309_v60 = vld [vmem:[#allocation3 + $0xc0] sm:$0xff] }
 0x268   :  { %1275 = vst [vmem:[#allocation3 + $0xf0] sm:$0xfe] %v1179_v53  ;;  %v1055_v63 = vmax.f32 %v3082_v46, 0.0  ;;  %v1310_v1 = vld [vmem:[#allocation3 + $0xc8] sm:$0xff]  ;;  %3005 = vmatprep.subr.bf16.mxu0 %v3004_v37 }
 0x269   :  { %1276 = vst [vmem:[#allocation3 + $0xf8] sm:$0xfe] %v1180_v49  ;;  %v1056_v51 = vmax.f32 %v3083_v50, 0.0  ;;  %v1010_v54 = vpop.f32.mrb[24].mxu1  ;;  %1902 = vmatprep.mubr.f32.mxu0 %v1310_v1  ;;  %v1325_v50 = vld [vmem:[#allocation3] sm:$0xfe] }
 0x26a   :  { %v1181_v2 = vrot.slane %v1055_v63, 7  ;;  %v3084_v4 = vadd.f32 %v1010_v54, %v4081_v13  ;;  %v1012_v0 = vpop.f32.mrb[25].mxu1  ;;  %1903 = vmatmul.mubr.f32.gmra.mrb[32].mxu0 %v1309_v60  ;;  %v1328_v63 = vld [vmem:[#allocation3 + $0x28] sm:$0x1]  ;;  %v1442_v1 = vrot.slane %v4101_v36, 1  ;;  %v1438_v60 = vrot.slane %v1325_v50, 1 }
 0x26b   :  { %v1183_v5 = vrot.slane %v1056_v51, 7  ;;  %v3085_v6 = vadd.f32 %v1012_v0, %v4083_v14  ;;  %1907 = vmatprep.mubr.f32.mxu0 %v4238_v43  ;;  %v1759_v51 = vld [vmem:[%s4647_s5 + $0x200] sm:$0xff]  ;;  %v1760_v54 = vld [vmem:[%s4647_s5 + $0x208] sm:$0xff] }
 0x26c   :  { %v4247_v8 = vsel %vm1148_vm2, %v1179_v53, %v1181_v2  ;;  %1279 = vst [vmem:[#allocation3 + $0x110] sm:$0x1] %v1181_v2  ;;  %v1057_v59 = vmax.f32 %v3084_v4, 0.0  ;;  %v1777_v2 = vld [vmem:[%s4647_s5 + $0x290] sm:$0xff]  ;;  %v1778_v4 = vld [vmem:[%s4647_s5 + $0x298] sm:$0xff] }
 0x26d   :  { %v4250_v7 = vsel %vm1148_vm2, %v1180_v49, %v1183_v5  ;;  %1280 = vst [vmem:[#allocation3 + $0x118] sm:$0x1] %v1183_v5  ;;  %v1058_v12 = vmax.f32 %v3085_v6, 0.0  ;;  %v1016_v15 = vpop.f32.mrb[26].mxu1  ;;  %v1446_v5 = vrot.slane %v1328_v63, 1 }
 0x26e   :  { %v1185_v18 = vrot.slane %v1057_v59, 7  ;;  %v3086_v3 = vadd.f32 %v1016_v15, %v4081_v13  ;;  %v1018_v10 = vpop.f32.mrb[27].mxu1  ;;  %1908 = vmatmul.mubr.f32.gmra.mrb[34].mxu0 %v4235_v32  ;;  %v1327_v6 = vld [vmem:[#allocation3 + $0x20] sm:$0x1]  ;;  %v1439_v59 = vrot.slane %v4092_v17, 1 }
 0x26f   :  { %v1186_v22 = vrot.slane %v1058_v12, 7  ;;  %v3087_v23 = vadd.f32 %v1018_v10, %v4083_v14  ;;  %v1313_v38 = vld [vmem:[#allocation3 + $0xf0] sm:$0xff]  ;;  %v3006_v12 = vpack.c.bf16 %v1760_v54, %v1759_v51  ;;  %v1330_v15 = vld [vmem:[#allocation3 + $0x38] sm:$0xfe]  ;;  %v1336_v51 = vld [vmem:[#allocation3 + $0x88] sm:$0x1] }
 0x270   :  { %1281 = vst [vmem:[#allocation3 + $0x120] sm:$0xfe] %v1185_v18  ;;  %v1059_v27 = vmax.f32 %v3086_v3, 0.0  ;;  %v1314_v19 = vld [vmem:[#allocation3 + $0xf8] sm:$0xff]  ;;  %v1761_v3 = vld [vmem:[%s4647_s5 + $0x210] sm:$0xff] }
 0x271   :  { %1282 = vst [vmem:[#allocation3 + $0x128] sm:$0xfe] %v1186_v22  ;;  %v1060_v25 = vmax.f32 %v3087_v23, 0.0  ;;  %v1022_v33 = vpop.f32.mrb[28].mxu1  ;;  %1912 = vmatprep.mubr.f32.mxu0 %v1314_v19  ;;  %v1762_v10 = vld [vmem:[%s4647_s5 + $0x218] sm:$0xff]  ;;  %v1444_v23 = vrot.slane %v1327_v6, 1 }
 0x272   :  { %v1187_v39 = vrot.slane %v1059_v27, 7  ;;  %v3088_v41 = vadd.f32 %v1022_v33, %v4081_v13  ;;  %v1024_v47 = vpop.f32.mrb[29].mxu1  ;;  %1913 = vmatmul.mubr.f32.gmra.mrb[36].mxu0 %v1313_v38  ;;  %v1779_v27 = vld [vmem:[%s4647_s5 + $0x2a0] sm:$0xff]  ;;  %v1780_v19 = vld [vmem:[%s4647_s5 + $0x2a8] sm:$0xff]  ;;  %v1451_v33 = vrot.slane %v1330_v15, 1 }
 0x273   :  { %v1189_v52 = vrot.slane %v1060_v25, 7  ;;  %v3089_v56 = vadd.f32 %v1024_v47, %v4083_v14  ;;  %1917 = vmatprep.mubr.f32.mxu0 %v4250_v7  ;;  %v1447_v25 = vsel %vm1437_vm3, %v1442_v1, %v1446_v5  ;;  %v1329_v38 = vld [vmem:[#allocation3 + $0x30] sm:$0xfe]  ;;  %v1452_v47 = vrot.slane %v4136_v57, 1 }
 0x274   :  { %v4259_v62 = vsel %vm1148_vm2, %v1185_v18, %v1187_v39  ;;  %1285 = vst [vmem:[#allocation3 + $0x140] sm:$0x1] %v1187_v39  ;;  %v1061_v9 = vmax.f32 %v3088_v41, 0.0  ;;  %v3008_v18 = vpack.c.bf16 %v1778_v4, %v1777_v2  ;;  %v3010_v39 = vpack.c.bf16 %v1762_v10, %v1761_v3  ;;  %v1332_v41 = vld [vmem:[#allocation3 + $0x58] sm:$0x1]  ;;  %v1767_v4 = vld [vmem:[%s4647_s5 + $0x240] sm:$0xff] }
 0x275   :  { %v4262_v16 = vsel %vm1148_vm2, %v1186_v22, %v1189_v52  ;;  %1286 = vst [vmem:[#allocation3 + $0x148] sm:$0x1] %v1189_v52  ;;  %v1062_v20 = vmax.f32 %v3089_v56, 0.0  ;;  %v1028_v28 = vpop.f32.mrb[30].mxu1  ;;  %v1440_v22 = vsel %vm1437_vm3, %v1438_v60, %v1439_v59  ;;  %v3012_v52 = vpack.c.bf16 %v1780_v19, %v1779_v27  ;;  %v1763_v56 = vld [vmem:[%s4647_s5 + $0x220] sm:$0xff]  ;;  %v1769_v19 = vld [vmem:[%s4647_s5 + $0x250] sm:$0xff] }
 0x276   :  { %v1191_v40 = vrot.slane %v1061_v9, 7  ;;  %v3090_v24 = vadd.f32 %v1028_v28, %v4081_v13  ;;  %v1030_v26 = vpop.f32.mrb[31].mxu1  ;;  %1918 = vmatmul.mubr.f32.gmra.mrb[38].mxu0 %v4247_v8  ;;  %v1764_v9 = vld [vmem:[%s4647_s5 + $0x228] sm:$0xff]  ;;  %v1448_v28 = vrot.slane %v1329_v38, 1  ;;  %v1462_v60 = vrot.slane %v4172_v30, 1 }
 0x277   :  { %v1192_v29 = vrot.slane %v1062_v20, 7  ;;  %v3091_v31 = vadd.f32 %v1030_v26, %v4083_v14  ;;  %v1317_v37 = vld [vmem:[#allocation3 + $0x120] sm:$0xff]  ;;  %v1326_v14 = vld [vmem:[#allocation3 + $0x8] sm:$0xfe]  ;;  %v1445_v20 = vsel %vm1437_vm3, %v1439_v59, %v1444_v23  ;;  %v1453_v26 = vsel %vm1437_vm3, %v1451_v33, %v1452_v47  ;;  %v1785_v59 = vld [vmem:[%s4647_s5 + $0x2d0] sm:$0xff] }
 0x278   :  { %1287 = vst [vmem:[#allocation3 + $0x150] sm:$0xfe] %v1191_v40  ;;  %v1063_v55 = vmax.f32 %v3090_v24, 0.0  ;;  %v1318_v58 = vld [vmem:[#allocation3 + $0x128] sm:$0xff]  ;;  %v1441_v49 = vrot.slane %v1326_v14, 1  ;;  %v1782_v24 = vld [vmem:[%s4647_s5 + $0x2b8] sm:$0xff] }
 0x279   :  { %1288 = vst [vmem:[#allocation3 + $0x158] sm:$0xfe] %v1192_v29  ;;  %v1064_v35 = vmax.f32 %v3091_v31, 0.0  ;;  %1922 = vmatprep.mubr.f32.mxu0 %v1318_v58  ;;  %v1331_v31 = vld [vmem:[#allocation3 + $0x50] sm:$0x1]  ;;  %v1459_v10 = vrot.slane %v4163_v34, 1 }
 0x27a   :  { %v1193_v44 = vrot.slane %v1063_v55, 7  ;;  %1923 = vmatmul.mubr.f32.gmra.mrb[40].mxu0 %v1317_v37  ;;  %v1443_v0 = vsel %vm1437_vm3, %v1441_v49, %v1442_v1  ;;  %v1449_v55 = vrot.slane %v4127_v61, 1  ;;  %v1334_v58 = vld [vmem:[#allocation3 + $0x68] sm:$0xfe]  ;;  %v1333_v1 = vld [vmem:[#allocation3 + $0x60] sm:$0xfe] }
 0x27b   :  { %v1195_v45 = vrot.slane %v1064_v35, 7  ;;  %1927 = vmatprep.mubr.f32.mxu0 %v4262_v16  ;;  %v3014_v35 = vpack.c.bf16 %v1764_v9, %v1763_v56  ;;  %v1784_v49 = vld [vmem:[%s4647_s5 + $0x2c8] sm:$0xff]  ;;  %v1461_v63 = vrot.slane %v1334_v58, 1  ;;  %v1458_v6 = vrot.slane %v1333_v1, 1  ;;  %v1335_v3 = vld [vmem:[#allocation3 + $0x80] sm:$0x1] }
 0x27c   :  { %v4269_v13 = vsel %vm1148_vm2, %v1191_v40, %v1193_v44  ;;  %1291 = vst [vmem:[#allocation3 + $0x170] sm:$0x1] %v1193_v44  ;;  %v1781_v40 = vld [vmem:[%s4647_s5 + $0x2b0] sm:$0xff]  ;;  %v1450_v14 = vsel %vm1437_vm3, %v1448_v28, %v1449_v55  ;;  %v1464_v38 = vrot.slane %v1335_v3, 1  ;;  %v1340_v9 = vld [vmem:[#allocation3 + $0xb8] sm:$0x1] }
 0x27d   :  { %v4272_v53 = vsel %vm1148_vm2, %v1192_v29, %v1195_v45  ;;  %1292 = vst [vmem:[#allocation3 + $0x178] sm:$0x1] %v1195_v45  ;;  %v1456_v29 = vrot.slane %v1332_v41, 1  ;;  %v3016_v37 = vpack.c.bf16 %v1782_v24, %v1781_v40  ;;  %v1765_v44 = vld [vmem:[%s4647_s5 + $0x230] sm:$0xff]  ;;  %v1766_v45 = vld [vmem:[%s4647_s5 + $0x238] sm:$0xff]  ;;  %v1463_v15 = vsel %vm1437_vm3, %v1461_v63, %v1462_v60  ;;  %v1788_v41 = vld [vmem:[%s4647_s5 + $0x2e8] sm:$0xff] }
 0x27e   :  { %1928 = vmatmul.mubr.f32.gmra.mrb[42].mxu0 %v4259_v62  ;;  %v3018_v54 = vpack.c.bf16 %v1766_v45, %v1765_v44  ;;  %v1460_v33 = vsel %vm1437_vm3, %v1458_v6, %v1459_v10  ;;  %v1337_v56 = vld [vmem:[#allocation3 + $0x90] sm:$0xfe]  ;;  %v1472_v28 = vrot.slane %v4208_v21, 1  ;;  %v1771_v24 = vld [vmem:[%s4647_s5 + $0x260] sm:$0xff]  ;;  %v1790_v58 = vld [vmem:[%s4647_s5 + $0x2f8] sm:$0xff]  ;;  %v1469_v45 = vrot.slane %v4199_v11, 1 }
 0x27f   :  { %v1321_v48 = vld [vmem:[#allocation3 + $0x150] sm:$0xff]  ;;  %v1457_v50 = vsel %vm1437_vm3, %v1452_v47, %v1456_v29  ;;  %v1465_v29 = vsel %vm1437_vm3, %v1459_v10, %v1464_v38  ;;  %v1346_v3 = vld [vmem:[#allocation3 + $0xf8] sm:$0xfe] }
 0x280   :  { %v1322_v46 = vld [vmem:[#allocation3 + $0x158] sm:$0xff]  ;;  %v1339_v44 = vld [vmem:[#allocation3 + $0xb0] sm:$0x1] }
 0x281   :  { %1932 = vmatprep.mubr.f32.mxu0 %v1322_v46  ;;  %v1454_v46 = vrot.slane %v1331_v31, 1  ;;  %v1468_v31 = vrot.slane %v1337_v56, 1  ;;  %v1474_v1 = vrot.slane %v1339_v44, 1  ;;  %v1489_v56 = vrot.slane %v4247_v8, 1  ;;  %v1351_v44 = vld [vmem:[#allocation3 + $0x140] sm:$0x1] }
 0x282   :  { %1933 = vmatmul.mubr.f32.gmra.mrb[44].mxu0 %v1321_v48  ;;  %v1783_v48 = vld [vmem:[%s4647_s5 + $0x2c0] sm:$0xff] }
 0x283   :  { %1937 = vmatprep.mubr.f32.mxu0 %v4272_v53  ;;  %v3020_v2 = vpack.c.bf16 %v1784_v49, %v1783_v48  ;;  %v1455_v5 = vsel %vm1437_vm3, %v1449_v55, %v1454_v46  ;;  %v1789_v55 = vld [vmem:[%s4647_s5 + $0x2f0] sm:$0xff]  ;;  %v1470_v63 = vsel %vm1437_vm3, %v1468_v31, %v1469_v45  ;;  %v1502_v31 = vrot.slane %v4262_v16, 1 }
 0x284   :  { %v3032_v48 = vpack.c.bf16 %v1790_v58, %v1789_v55  ;;  %v1773_v49 = vld [vmem:[%s4647_s5 + $0x270] sm:$0xff] }
 0x286   :  { %1938 = vmatmul.mubr.f32.gmra.mrb[46].mxu0 %v4269_v13 }
 0x287   :  { %2007 = vmatprep.mubr.f32.mxu0 %v1443_v0  ;;  %v1768_v0 = vld [vmem:[%s4647_s5 + $0x248] sm:$0xff] }
 0x288   :  { %v3022_v23 = vpack.c.bf16 %v1768_v0, %v1767_v4  ;;  %v1482_v0 = vrot.slane %v4238_v43, 1 }
 0x28a   :  { %2008 = vmatmul.mubr.f32.vlgmr.msra.gmra.mrb[48].mxu0 %v1440_v22  ;;  %v1338_v22 = vld [vmem:[#allocation3 + $0x98] sm:$0xfe] }
 0x28b   :  { %3007 = vmatpush3.bf16.msra.mxu0 %v3006_v12  ;;  %2012 = vmatprep.mubr.f32.mxu0 %v1447_v25  ;;  %v1786_v12 = vld [vmem:[%s4647_s5 + $0x2d8] sm:$0xff] }
 0x28c   :  { %3009 = vmatprep.subr.bf16.mxu0 %v3008_v18  ;;  %v1466_v18 = vrot.slane %v1336_v51, 1  ;;  %v3024_v27 = vpack.c.bf16 %v1786_v12, %v1785_v59  ;;  %v1770_v25 = vld [vmem:[%s4647_s5 + $0x258] sm:$0xff] }
 0x28e   :  { %2013 = vmatmul.mubr.f32.gmra.mrb[50].mxu0 %v1445_v20  ;;  %v1467_v47 = vsel %vm1437_vm3, %v1462_v60, %v1466_v18  ;;  %v3026_v20 = vpack.c.bf16 %v1770_v25, %v1769_v19  ;;  %v1341_v60 = vld [vmem:[#allocation3 + $0xc0] sm:$0xfe]  ;;  %v1479_v18 = vrot.slane %v4235_v32, 1  ;;  %v1345_v19 = vld [vmem:[#allocation3 + $0xf0] sm:$0xfe] }
 0x28f   :  { %2017 = vmatprep.mubr.f32.mxu0 %v1453_v26  ;;  %3011 = vmatpush3.bf16.msra.mxu0 %v3010_v39  ;;  %v1787_v39 = vld [vmem:[%s4647_s5 + $0x2e0] sm:$0xff]  ;;  %v1772_v26 = vld [vmem:[%s4647_s5 + $0x268] sm:$0xff]  ;;  %v1478_v6 = vrot.slane %v1341_v60, 1  ;;  %v1348_v25 = vld [vmem:[#allocation3 + $0x118] sm:$0x1] }
 0x290   :  { %3013 = vmatprep.subr.bf16.mxu0 %v3012_v52  ;;  %v1471_v52 = vrot.slane %v1338_v22, 1  ;;  %v3028_v40 = vpack.c.bf16 %v1788_v41, %v1787_v39  ;;  %v3030_v46 = vpack.c.bf16 %v1772_v26, %v1771_v24  ;;  %v1488_v39 = vrot.slane %v1345_v19, 1  ;;  %v1349_v26 = vld [vmem:[#allocation3 + $0x120] sm:$0xfe] }
 0x291   :  { %v1480_v10 = vsel %vm1437_vm3, %v1478_v6, %v1479_v18  ;;  %v1498_v58 = vrot.slane %v1349_v26, 1  ;;  %v1358_v6 = vld [vmem:[#allocation3 + $0x8] sm:$0xfc]  ;;  %v1363_v26 = vld [vmem:[#allocation3 + $0x50] sm:$0x3] }
 0x292   :  { %2018 = vmatmul.mubr.f32.gmra.mrb[52].mxu0 %v1450_v14  ;;  %v1342_v14 = vld [vmem:[#allocation3 + $0xc8] sm:$0xfe] }
 0x293   :  { %2022 = vmatprep.mubr.f32.mxu0 %v1457_v50  ;;  %3015 = vmatpush3.bf16.msra.mxu0 %v3014_v35  ;;  %v1473_v35 = vsel %vm1437_vm3, %v1471_v52, %v1472_v28  ;;  %v1774_v50 = vld [vmem:[%s4647_s5 + $0x278] sm:$0xff]  ;;  %v1347_v52 = vld [vmem:[#allocation3 + $0x110] sm:$0x1] }
 0x294   :  { %3017 = vmatprep.subr.bf16.mxu0 %v3016_v37  ;;  %v1476_v37 = vrot.slane %v1340_v9, 1  ;;  %v3034_v4 = vpack.c.bf16 %v1774_v50, %v1773_v49  ;;  %v1350_v9 = vld [vmem:[#allocation3 + $0x128] sm:$0xfe] }
 0x295   :  { %v1501_v24 = vrot.slane %v1350_v9, 1  ;;  %v1364_v9 = vld [vmem:[#allocation3 + $0x58] sm:$0x3] }
 0x296   :  { %2023 = vmatmul.mubr.f32.gmra.mrb[54].mxu0 %v1455_v5  ;;  %v1477_v51 = vsel %vm1437_vm3, %v1472_v28, %v1476_v37  ;;  %v1475_v5 = vsel %vm1437_vm3, %v1469_v45, %v1474_v1  ;;  %v1494_v28 = vrot.slane %v1347_v52, 1  ;;  %v1499_v45 = vrot.slane %v4259_v62, 1  ;;  %v1356_v1 = vld [vmem:[#allocation3 + $0x178] sm:$0x1] }
 0x297   :  { %2027 = vmatprep.mubr.f32.mxu0 %v1463_v15  ;;  %3019 = vmatpush3.bf16.msra.mxu0 %v3018_v54  ;;  %v1481_v54 = vrot.slane %v1342_v14, 1  ;;  %v1343_v15 = vld [vmem:[#allocation3 + $0xe0] sm:$0x1]  ;;  %v1354_v14 = vld [vmem:[#allocation3 + $0x158] sm:$0xfe] }
 0x298   :  { %3021 = vmatprep.subr.bf16.mxu0 %v3020_v2  ;;  %v1344_v2 = vld [vmem:[#allocation3 + $0xe8] sm:$0x1]  ;;  %v1484_v22 = vrot.slane %v1343_v15, 1  ;;  %v1495_v55 = vsel %vm1437_vm3, %v1489_v56, %v1494_v28  ;;  %v1511_v50 = vrot.slane %v1354_v14, 1 }
 0x299   :  { %v1483_v59 = vsel %vm1437_vm3, %v1481_v54, %v1482_v0  ;;  %v1486_v12 = vrot.slane %v1344_v2, 1 }
 0x29a   :  { %2028 = vmatmul.mubr.f32.gmra.mrb[56].mxu0 %v1460_v33  ;;  %v1492_v33 = vrot.slane %v4250_v7, 1  ;;  %v1485_v38 = vsel %vm1437_vm3, %v1479_v18, %v1484_v22  ;;  %v1586_v18 = vrot.slane %v1358_v6, 2  ;;  %v1587_v22 = vrot.slane %v4101_v36, 2  ;;  %v1361_v36 = vld [vmem:[#allocation3 + $0x30] sm:$0xfc] }
 0x29b   :  { %2032 = vmatprep.mubr.f32.mxu0 %v1467_v47  ;;  %3023 = vmatpush3.bf16.msra.mxu0 %v3022_v23  ;;  %v1487_v23 = vsel %vm1437_vm3, %v1482_v0, %v1486_v12  ;;  %v1496_v47 = vrot.slane %v1348_v25, 1  ;;  %v1355_v0 = vld [vmem:[#allocation3 + $0x170] sm:$0x1] }
 0x29c   :  { %3025 = vmatprep.subr.bf16.mxu0 %v3024_v27  ;;  %v1491_v27 = vrot.slane %v1346_v3, 1  ;;  %v1514_v12 = vrot.slane %v1355_v0, 1  ;;  %v1357_v3 = vld [vmem:[#allocation3] sm:$0xfc]  ;;  %v1588_v19 = vsel %vm1582_vm4, %v1586_v18, %v1587_v22 }
 0x29e   :  { %2033 = vmatmul.mubr.f32.gmra.mrb[58].mxu0 %v1465_v29  ;;  %v1493_v41 = vsel %vm1437_vm3, %v1491_v27, %v1492_v33  ;;  %v1352_v29 = vld [vmem:[#allocation3 + $0x148] sm:$0x1]  ;;  %v1583_v27 = vrot.slane %v1357_v3, 2 }
 0x29f   :  { %2037 = vmatprep.mubr.f32.mxu0 %v1473_v35  ;;  %3027 = vmatpush3.bf16.msra.mxu0 %v3026_v20  ;;  %v1490_v20 = vsel %vm1437_vm3, %v1488_v39, %v1489_v56  ;;  %v1503_v35 = vsel %vm1437_vm3, %v1501_v24, %v1502_v31  ;;  %v1506_v37 = vrot.slane %v1352_v29, 1  ;;  %v1362_v39 = vld [vmem:[#allocation3 + $0x38] sm:$0xfc]  ;;  %v1601_v24 = vrot.slane %v1364_v9, 2  ;;  %v1380_v9 = vld [vmem:[#allocation3 + $0x118] sm:$0x3] }
 0x2a0   :  { %3029 = vmatprep.subr.bf16.mxu0 %v3028_v40  ;;  %v1497_v40 = vsel %vm1437_vm3, %v1492_v33, %v1496_v47  ;;  %v1359_v33 = vld [vmem:[#allocation3 + $0x20] sm:$0x3]  ;;  %v1596_v56 = vrot.slane %v1362_v39, 2  ;;  %v1594_v29 = vrot.slane %v4127_v61, 2  ;;  %v1624_v39 = vrot.slane %v4235_v32, 2 }
 0x2a1   :  { %v1507_v49 = vsel %vm1437_vm3, %v1502_v31, %v1506_v37  ;;  %v1589_v47 = vrot.slane %v1359_v33, 2  ;;  %v1366_v31 = vld [vmem:[#allocation3 + $0x68] sm:$0xfc] }
 0x2a2   :  { %2038 = vmatmul.mubr.f32.gmra.mrb[60].mxu0 %v1470_v63  ;;  %v1353_v63 = vld [vmem:[#allocation3 + $0x150] sm:$0xfe]  ;;  %v1606_v37 = vrot.slane %v1366_v31, 2 }
 0x2a3   :  { %2042 = vmatprep.mubr.f32.mxu0 %v1477_v51  ;;  %3031 = vmatpush3.bf16.msra.mxu0 %v3030_v46  ;;  %v1500_v46 = vsel %vm1437_vm3, %v1498_v58, %v1499_v45  ;;  %v1512_v51 = vrot.slane %v4272_v53, 1  ;;  %v1508_v60 = vrot.slane %v1353_v63, 1  ;;  %v1599_v58 = vrot.slane %v1363_v26, 2  ;;  %v1370_v63 = vld [vmem:[#allocation3 + $0x98] sm:$0xfc] }
 0x2a4   :  { %3033 = vmatprep.subr.bf16.mxu0 %v3032_v48  ;;  %v1504_v48 = vrot.slane %v1351_v44, 1  ;;  %v1368_v44 = vld [vmem:[#allocation3 + $0x88] sm:$0x3]  ;;  %v1634_v26 = vrot.slane %v4247_v8, 2 }
 0x2a5   :  { %v1513_v2 = vsel %vm1437_vm3, %v1511_v50, %v1512_v51  ;;  %v1600_v14 = vsel %vm1582_vm4, %v1594_v29, %v1599_v58  ;;  %v1604_v50 = vrot.slane %v4163_v34, 2 }
 0x2a6   :  { %2043 = vmatmul.mubr.f32.gmra.mrb[62].mxu0 %v1475_v5  ;;  %v1505_v54 = vsel %vm1437_vm3, %v1499_v45, %v1504_v48  ;;  %v1509_v5 = vrot.slane %v4269_v13, 1  ;;  %v1607_v45 = vrot.slane %v4172_v30, 2  ;;  %v1611_v48 = vrot.slane %v1368_v44, 2  ;;  %v1369_v30 = vld [vmem:[#allocation3 + $0x90] sm:$0xfc] }
 0x2a7   :  { %2047 = vmatprep.mubr.f32.mxu0 %v1483_v59  ;;  %3035 = vmatpush3.bf16.msra.mxu0 %v3034_v4  ;;  %v1516_v4 = vrot.slane %v1356_v1, 1 }
 0x2a8   :  { %v1510_v59 = vsel %vm1437_vm3, %v1508_v60, %v1509_v5  ;;  %v1608_v61 = vsel %vm1582_vm4, %v1606_v37, %v1607_v45  ;;  %v1616_v60 = vrot.slane %v1370_v63, 2  ;;  %v1384_v37 = vld [vmem:[#allocation3 + $0x148] sm:$0x3] }
 0x2a9   :  { %v1517_v15 = vsel %vm1437_vm3, %v1512_v51, %v1516_v4  ;;  %v1617_v4 = vrot.slane %v4208_v21, 2  ;;  %v1373_v21 = vld [vmem:[#allocation3 + $0xc0] sm:$0xfc] }
 0x2aa   :  { %2048 = vmatmul.mubr.f32.gmra.mrb[64].mxu0 %v1480_v10  ;;  %v1360_v10 = vld [vmem:[#allocation3 + $0x28] sm:$0x3] }
 0x2ab   :  { %2052 = vmatprep.mubr.f32.mxu0 %v1487_v23  ;;  %v1515_v23 = vsel %vm1437_vm3, %v1509_v5, %v1514_v12  ;;  %v1591_v25 = vrot.slane %v1360_v10, 2  ;;  %v1613_v5 = vrot.slane %v1369_v30, 2  ;;  %v1618_v34 = vsel %vm1582_vm4, %v1616_v60, %v1617_v4 }
 0x2ac   :  { %v1614_v12 = vrot.slane %v4199_v11, 2 }
 0x2ad   :  { %v1592_v52 = vsel %vm1582_vm4, %v1587_v22, %v1591_v25  ;;  %v1623_v25 = vrot.slane %v1373_v21, 2 }
 0x2ae   :  { %2053 = vmatmul.mubr.f32.gmra.mrb[66].mxu0 %v1485_v38  ;;  %v1584_v38 = vrot.slane %v4092_v17, 2  ;;  %v1615_v18 = vsel %vm1582_vm4, %v1613_v5, %v1614_v12 }
 0x2af   :  { %2057 = vmatprep.mubr.f32.mxu0 %v1493_v41 }
 0x2b0   :  { %v1585_v41 = vsel %vm1582_vm4, %v1583_v27, %v1584_v38  ;;  %v1590_v28 = vsel %vm1582_vm4, %v1584_v38, %v1589_v47  ;;  %v1627_v27 = vrot.slane %v4238_v43, 2  ;;  %v1375_v38 = vld [vmem:[#allocation3 + $0xe0] sm:$0x3]  ;;  %v1625_v47 = vsel %vm1582_vm4, %v1623_v25, %v1624_v39  ;;  %v1377_v43 = vld [vmem:[#allocation3 + $0xf0] sm:$0xfc] }
 0x2b2   :  { %2058 = vmatmul.mubr.f32.gmra.mrb[68].mxu0 %v1490_v20  ;;  %v1597_v20 = vrot.slane %v4136_v57, 2  ;;  %v1365_v57 = vld [vmem:[#allocation3 + $0x60] sm:$0xfc] }
 0x2b3   :  { %2062 = vmatprep.mubr.f32.mxu0 %v1497_v40  ;;  %v1593_v40 = vrot.slane %v1361_v36, 2 }
 0x2b4   :  { %v1598_v17 = vsel %vm1582_vm4, %v1596_v56, %v1597_v20 }
 0x2b6   :  { %2063 = vmatmul.mubr.f32.gmra.mrb[70].mxu0 %v1495_v55  ;;  %v1595_v55 = vsel %vm1582_vm4, %v1593_v40, %v1594_v29  ;;  %v1633_v40 = vrot.slane %v1377_v43, 2  ;;  %v1382_v29 = vld [vmem:[#allocation3 + $0x128] sm:$0xfc] }
 0x2b7   :  { %2067 = vmatprep.mubr.f32.mxu0 %v1503_v35  ;;  %v1602_v35 = vsel %vm1582_vm4, %v1597_v20, %v1601_v24  ;;  %v1637_v20 = vrot.slane %v4250_v7, 2  ;;  %v1379_v24 = vld [vmem:[#allocation3 + $0x110] sm:$0x3]  ;;  %v1381_v7 = vld [vmem:[#allocation3 + $0x120] sm:$0xfc] }
 0x2b8   :  { %v1635_v31 = vsel %vm1582_vm4, %v1633_v40, %v1634_v26 }
 0x2ba   :  { %2068 = vmatmul.mubr.f32.gmra.mrb[72].mxu0 %v1500_v46  ;;  %v1603_v46 = vrot.slane %v1365_v57, 2  ;;  %v1647_v57 = vrot.slane %v4262_v16, 2  ;;  %v1385_v16 = vld [vmem:[#allocation3 + $0x150] sm:$0xfc] }
 0x2bb   :  { %2072 = vmatprep.mubr.f32.mxu0 %v1507_v49  ;;  %v1367_v49 = vld [vmem:[#allocation3 + $0x80] sm:$0x3]  ;;  %v1653_v30 = vrot.slane %v1385_v16, 2 }
 0x2bc   :  { %v1605_v1 = vsel %vm1582_vm4, %v1603_v46, %v1604_v50  ;;  %v1609_v51 = vrot.slane %v1367_v49, 2  ;;  %v1383_v46 = vld [vmem:[#allocation3 + $0x140] sm:$0x3] }
 0x2be   :  { %2073 = vmatmul.mubr.f32.gmra.mrb[74].mxu0 %v1505_v54  ;;  %v1612_v54 = vsel %vm1582_vm4, %v1607_v45, %v1611_v48  ;;  %v1610_v0 = vsel %vm1582_vm4, %v1604_v50, %v1609_v51  ;;  %v1643_v45 = vrot.slane %v1381_v7, 2  ;;  %v1386_v48 = vld [vmem:[#allocation3 + $0x158] sm:$0xfc]  ;;  %v1649_v50 = vrot.slane %v1383_v46, 2  ;;  %v1388_v51 = vld [vmem:[#allocation3 + $0x178] sm:$0x3] }
 0x2bf   :  { %2077 = vmatprep.mubr.f32.mxu0 %v1513_v2  ;;  %v1372_v2 = vld [vmem:[#allocation3 + $0xb8] sm:$0x3] }
 0x2c0   :  { %v1621_v6 = vrot.slane %v1372_v2, 2  ;;  %v1661_v2 = vrot.slane %v1388_v51, 2 }
 0x2c2   :  { %2078 = vmatmul.mubr.f32.gmra.mrb[76].mxu0 %v1510_v59  ;;  %v1371_v59 = vld [vmem:[#allocation3 + $0xb0] sm:$0x3]  ;;  %v1622_v10 = vsel %vm1582_vm4, %v1617_v4, %v1621_v6 }
 0x2c3   :  { %2082 = vmatprep.mubr.f32.mxu0 %v1517_v15  ;;  %v1374_v15 = vld [vmem:[#allocation3 + $0xc8] sm:$0xfc]  ;;  %v1619_v3 = vrot.slane %v1371_v59, 2  ;;  %v1387_v4 = vld [vmem:[#allocation3 + $0x170] sm:$0x3] }
 0x2c4   :  { %v1626_v22 = vrot.slane %v1374_v15, 2 }
 0x2c6   :  { %2083 = vmatmul.mubr.f32.gmra.mrb[78].mxu0 %v1515_v23  ;;  %v1376_v23 = vld [vmem:[#allocation3 + $0xe8] sm:$0x3]  ;;  %v1628_v11 = vsel %vm1582_vm4, %v1626_v22, %v1627_v27 }
 0x2c7   :  { %2152 = vmatprep.mubr.f32.mxu0 %v1588_v19  ;;  %v1620_v19 = vsel %vm1582_vm4, %v1614_v12, %v1619_v3  ;;  %v1631_v33 = vrot.slane %v1376_v23, 2 }
 0x2c9   :  { %v1632_v56 = vsel %vm1582_vm4, %v1627_v27, %v1631_v33 }
 0x2ca   :  { %2153 = vmatmul.mubr.f32.vlgmr.msra.gmra.mrb[80].mxu0 %v1585_v41  ;;  %v1378_v41 = vld [vmem:[#allocation3 + $0xf8] sm:$0xfc] }
 0x2cb   :  { %2157 = vmatprep.mubr.f32.mxu0 %v1592_v52  ;;  %v1629_v52 = vrot.slane %v1375_v38, 2  ;;  %v1636_v36 = vrot.slane %v1378_v41, 2 }
 0x2cd   :  { %v1638_v32 = vsel %vm1582_vm4, %v1636_v36, %v1637_v20 }
 0x2ce   :  { %2158 = vmatmul.mubr.f32.gmra.mrb[82].mxu0 %v1590_v28  ;;  %v1630_v28 = vsel %vm1582_vm4, %v1624_v39, %v1629_v52 }
 0x2cf   :  { %2162 = vmatprep.mubr.f32.mxu0 %v1598_v17  ;;  %v1641_v17 = vrot.slane %v1380_v9, 2 }
 0x2d1   :  { %v1642_v58 = vsel %vm1582_vm4, %v1637_v20, %v1641_v17  ;;  %v2305_v17 = vld [vmem:[%s4649_s7] sm:$0xff] }
 0x2d2   :  { %2163 = vmatmul.mubr.f32.gmra.mrb[84].mxu0 %v1595_v55  ;;  %v1639_v55 = vrot.slane %v1379_v24, 2  ;;  %v2306_v24 = vld [vmem:[%s4649_s7 + $0x8] sm:$0xff] }
 0x2d3   :  { %2167 = vmatprep.mubr.f32.mxu0 %v1602_v35  ;;  %v1646_v35 = vrot.slane %v1382_v29, 2  ;;  %v3037_v29 = vpack.c.bf16 %v2306_v24, %v2305_v17 }
 0x2d4   :  { %v1640_v44 = vsel %vm1582_vm4, %v1634_v26, %v1639_v55 }
 0x2d5   :  { %v1648_v8 = vsel %vm1582_vm4, %v1646_v35, %v1647_v57 }
 0x2d6   :  { %2168 = vmatmul.mubr.f32.gmra.mrb[86].mxu0 %v1600_v14  ;;  %v1651_v14 = vrot.slane %v1384_v37, 2  ;;  %v2307_v37 = vld [vmem:[%s4649_s7 + $0x10] sm:$0xff] }
 0x2d7   :  { %2172 = vmatprep.mubr.f32.mxu0 %v1608_v61  ;;  %v1644_v61 = vrot.slane %v4259_v62, 2 }
 0x2d8   :  { %v1652_v63 = vsel %vm1582_vm4, %v1647_v57, %v1651_v14  ;;  %v2308_v57 = vld [vmem:[%s4649_s7 + $0x18] sm:$0xff] }
 0x2d9   :  { %v1645_v49 = vsel %vm1582_vm4, %v1643_v45, %v1644_v61  ;;  %v1650_v60 = vsel %vm1582_vm4, %v1644_v61, %v1649_v50  ;;  %v2309_v61 = vld [vmem:[%s4649_s7 + $0x20] sm:$0xff] }
 0x2da   :  { %2173 = vmatmul.mubr.f32.gmra.mrb[88].mxu0 %v1605_v1  ;;  %v1656_v1 = vrot.slane %v1386_v48, 2  ;;  %v2310_v48 = vld [vmem:[%s4649_s7 + $0x28] sm:$0xff] }
 0x2db   :  { %2177 = vmatprep.mubr.f32.mxu0 %v1612_v54  ;;  %v1657_v54 = vrot.slane %v4272_v53, 2  ;;  %v3043_v50 = vpack.c.bf16 %v2310_v48, %v2309_v61 }
 0x2dd   :  { %v1658_v62 = vsel %vm1582_vm4, %v1656_v1, %v1657_v54  ;;  %v1662_v6 = vsel %vm1582_vm4, %v1657_v54, %v1661_v2 }
 0x2de   :  { %2178 = vmatmul.mubr.f32.gmra.mrb[90].mxu0 %v1610_v0  ;;  %v1654_v0 = vrot.slane %v4269_v13, 2 }
 0x2df   :  { %2182 = vmatprep.mubr.f32.mxu0 %v1618_v34  ;;  %v1659_v34 = vrot.slane %v1387_v4, 2 }
 0x2e0   :  { %v1655_v5 = vsel %vm1582_vm4, %v1653_v30, %v1654_v0  ;;  %v2312_v30 = vld [vmem:[%s4649_s7 + $0x38] sm:$0xff] }
 0x2e1   :  { %v1660_v53 = vsel %vm1582_vm4, %v1654_v0, %v1659_v34 }
 0x2e2   :  { %2183 = vmatmul.mubr.f32.gmra.mrb[92].mxu0 %v1615_v18 }
 0x2e3   :  { %2187 = vmatprep.mubr.f32.mxu0 %v1622_v10 }
 0x2e6   :  { %2188 = vmatmul.mubr.f32.gmra.mrb[94].mxu0 %v1620_v19 }
 0x2e7   :  { %2192 = vmatprep.mubr.f32.mxu0 %v1628_v11 }
 0x2ea   :  { %2193 = vmatmul.mubr.f32.gmra.mrb[96].mxu0 %v1625_v47 }
 0x2eb   :  { %2197 = vmatprep.mubr.f32.mxu0 %v1632_v56 }
 0x2ee   :  { %2198 = vmatmul.mubr.f32.gmra.mrb[98].mxu0 %v1630_v28 }
 0x2ef   :  { %2202 = vmatprep.mubr.f32.mxu0 %v1638_v32  ;;  %v3160_v32 = vmov 0.0|0.0  }
 0x2f0   :  { %3036 = vmatprep.subr.bf16.mxu0 %v3160_v32 }
 0x2f1   :  { %3038 = vmatpush3.bf16.msra.mxu0 %v3037_v29 }
 0x2f2   :  { %2203 = vmatmul.mubr.f32.gmra.mrb[100].mxu0 %v1635_v31  ;;  %3039 = vmatprep.subr.bf16.mxu0 %v3160_v32 }
 0x2f3   :  { %2207 = vmatprep.mubr.f32.mxu0 %v1642_v58 }
 0x2f6   :  { %2208 = vmatmul.mubr.f32.gmra.mrb[102].mxu0 %v1640_v44  ;;  %v3040_v44 = vpack.c.bf16 %v2308_v57, %v2307_v37  ;;  %v2320_v37 = vld [vmem:[%s4649_s7 + $0x78] sm:$0xff] }
 0x2f7   :  { %2212 = vmatprep.mubr.f32.mxu0 %v1648_v8 }
 0x2f8   :  { %3041 = vmatpush3.bf16.msra.mxu0 %v3040_v44 }
 0x2f9   :  { %3042 = vmatprep.subr.bf16.mxu0 %v3160_v32 }
 0x2fa   :  { %2213 = vmatmul.mubr.f32.gmra.mrb[104].mxu0 %v1645_v49 }
 0x2fb   :  { %2217 = vmatprep.mubr.f32.mxu0 %v1652_v63 }
 0x2fc   :  { %3044 = vmatpush3.bf16.msra.mxu0 %v3043_v50 }
 0x2fd   :  { %3045 = vmatprep.subr.bf16.mxu0 %v3160_v32 }
 0x2fe   :  { %2218 = vmatmul.mubr.f32.gmra.mrb[106].mxu0 %v1650_v60  ;;  %v2311_v60 = vld [vmem:[%s4649_s7 + $0x30] sm:$0xff] }
 0x2ff   :  { %2222 = vmatprep.mubr.f32.mxu0 %v1658_v62  ;;  %v3046_v2 = vpack.c.bf16 %v2312_v30, %v2311_v60 }
 0x301   :  { %3047 = vmatpush3.bf16.msra.mxu0 %v3046_v2 }
 0x302   :  { %2223 = vmatmul.mubr.f32.gmra.mrb[108].mxu0 %v1655_v5  ;;  %3048 = vmatprep.subr.bf16.mxu0 %v3160_v32 }
 0x303   :  { %2227 = vmatprep.mubr.f32.mxu0 %v1662_v6  ;;  %v4527_v6 = vld [vmem:[%s4650_s6] ss:$0 sm:$0xff] }
 0x306   :  { %2228 = vmatmul.mubr.f32.gmra.mrb[110].mxu0 %v1660_v53 }
 0x307   :  { %2777 = vmatprep.mubr.msk.f32.mxu0 %vm3161_vm5, %v3159_v42 }
 0x31d   :  { %v2494_v59 = vpop.f32.mrb[16].mxu0 }
 0x31e   :  { %v2495_v12 = vpop.f32.mrb[17].mxu0 }
 0x31f   :  { %v4463_v15 = vadd.f32 %v2495_v12, %v2494_v59  ;;  %v2313_v59 = vld [vmem:[%s4649_s7 + $0x40] sm:$0xff]  ;;  %v2314_v12 = vld [vmem:[%s4649_s7 + $0x48] sm:$0xff] }
 0x321   :  { %v2497_v18 = vpop.f32.mrb[18].mxu0 }
 0x322   :  { %v2498_v3 = vpop.f32.mrb[19].mxu0 }
 0x323   :  { %v4465_v10 = vadd.f32 %v2498_v3, %v2497_v18  ;;  %v3049_v3 = vpack.c.bf16 %v2314_v12, %v2313_v59 }
 0x325   :  { %v2500_v13 = vpop.f32.mrb[20].mxu0  ;;  %3050 = vmatpush3.bf16.msra.mxu0 %v3049_v3 }
 0x326   :  { %v2501_v22 = vpop.f32.mrb[21].mxu0  ;;  %3051 = vmatprep.subr.bf16.mxu0 %v3160_v32 }
 0x327   :  { %v4467_v21 = vadd.f32 %v2501_v22, %v2500_v13  ;;  %v1865_v13 = vadd.f32 %v4463_v15, %v4527_v6  ;;  %v2316_v15 = vld [vmem:[%s4649_s7 + $0x58] sm:$0xff] }
 0x329   :  { %v2503_v23 = vpop.f32.mrb[22].mxu0 }
 0x32a   :  { %v2504_v27 = vpop.f32.mrb[23].mxu0 }
 0x32b   :  { %v4469_v19 = vadd.f32 %v2504_v27, %v2503_v23 }
 0x32d   :  { %v2506_v25 = vpop.f32.mrb[24].mxu0 }
 0x32e   :  { %v2507_v11 = vpop.f32.mrb[25].mxu0 }
 0x32f   :  { %v4471_v33 = vadd.f32 %v2507_v11, %v2506_v25  ;;  %v1870_v11 = vadd.f32 %v4465_v10, %v4527_v6 }
 0x331   :  { %v2509_v38 = vpop.f32.mrb[26].mxu0 }
 0x332   :  { %v2510_v39 = vpop.f32.mrb[27].mxu0 }
 0x333   :  { %v4473_v41 = vadd.f32 %v2510_v39, %v2509_v38 }
 0x335   :  { %v2512_v47 = vpop.f32.mrb[28].mxu0  ;;  %v1890_v42 = vadd.f32 %v4473_v41, %v4527_v6 }
 0x336   :  { %v2513_v52 = vpop.f32.mrb[29].mxu0 }
 0x337   :  { %v4475_v56 = vadd.f32 %v2513_v52, %v2512_v47  ;;  %v2315_v52 = vld [vmem:[%s4649_s7 + $0x50] sm:$0xff] }
 0x339   :  { %v2515_v36 = vpop.f32.mrb[30].mxu0  ;;  %v1895_v60 = vadd.f32 %v4475_v56, %v4527_v6 }
 0x33a   :  { %v2516_v43 = vpop.f32.mrb[31].mxu0 }
 0x33b   :  { %v4477_v9 = vadd.f32 %v2516_v43, %v2515_v36  ;;  %v3052_v43 = vpack.c.bf16 %v2316_v15, %v2315_v52 }
 0x33d   :  { %v2518_v20 = vpop.f32.mrb[32].mxu0  ;;  %3053 = vmatpush3.bf16.msra.mxu0 %v3052_v43  ;;  %v1900_v2 = vadd.f32 %v4477_v9, %v4527_v6 }
 0x33e   :  { %v2519_v28 = vpop.f32.mrb[33].mxu0  ;;  %3054 = vmatprep.subr.bf16.mxu0 %v3160_v32 }
 0x33f   :  { %v4479_v40 = vadd.f32 %v2519_v28, %v2518_v20  ;;  %v1875_v20 = vadd.f32 %v4467_v21, %v4527_v6  ;;  %v2318_v21 = vld [vmem:[%s4649_s7 + $0x68] sm:$0xff] }
 0x341   :  { %v2521_v26 = vpop.f32.mrb[34].mxu0  ;;  %v1905_v59 = vadd.f32 %v4479_v40, %v4527_v6 }
 0x342   :  { %v2522_v31 = vpop.f32.mrb[35].mxu0 }
 0x343   :  { %v4488_v55 = vadd.f32 %v2522_v31, %v2521_v26  ;;  %v1880_v26 = vadd.f32 %v4469_v19, %v4527_v6  ;;  %v2317_v31 = vld [vmem:[%s4649_s7 + $0x60] sm:$0xff] }
 0x345   :  { %v2524_v58 = vpop.f32.mrb[36].mxu0 }
 0x346   :  { %v2525_v35 = vpop.f32.mrb[37].mxu0 }
 0x347   :  { %v4491_v7 = vadd.f32 %v2525_v35, %v2524_v58  ;;  %v2319_v58 = vld [vmem:[%s4649_s7 + $0x70] sm:$0xff]  ;;  %v3055_v35 = vpack.c.bf16 %v2318_v21, %v2317_v31 }
 0x349   :  { %v2527_v45 = vpop.f32.mrb[38].mxu0  ;;  %3056 = vmatpush3.bf16.msra.mxu0 %v3055_v35 }
 0x34a   :  { %v2528_v8 = vpop.f32.mrb[39].mxu0  ;;  %3057 = vmatprep.subr.bf16.mxu0 %v3160_v32 }
 0x34b   :  { %v4499_v14 = vadd.f32 %v2528_v8, %v2527_v45  ;;  %v3058_v45 = vpack.c.bf16 %v2320_v37, %v2319_v58  ;;  %v1885_v8 = vadd.f32 %v4471_v33, %v4527_v6 }
 0x34d   :  { %v2530_v46 = vpop.f32.mrb[40].mxu0  ;;  %3059 = vmatpush3.bf16.msra.mxu0 %v3058_v45  ;;  %v1920_v15 = vadd.f32 %v4499_v14, %v4527_v6 }
 0x34e   :  { %v2531_v49 = vpop.f32.mrb[41].mxu0 }
 0x34f   :  { %v4508_v63 = vadd.f32 %v2531_v49, %v2530_v46 }
 0x351   :  { %v2533_v1 = vpop.f32.mrb[42].mxu0 }
 0x352   :  { %v2534_v16 = vpop.f32.mrb[43].mxu0 }
 0x353   :  { %v4511_v51 = vadd.f32 %v2534_v16, %v2533_v1 }
 0x355   :  { %v2536_v54 = vpop.f32.mrb[44].mxu0 }
 0x356   :  { %v2537_v62 = vpop.f32.mrb[45].mxu0 }
 0x357   :  { %v4519_v4 = vadd.f32 %v2537_v62, %v2536_v54 }
 0x359   :  { %v2539_v0 = vpop.f32.mrb[46].mxu0  ;;  %v1935_v35 = vadd.f32 %v4519_v4, %v4527_v6 }
 0x35a   :  { %v2540_v5 = vpop.f32.mrb[47].mxu0 }
 0x35b   :  { %v4522_v34 = vadd.f32 %v2540_v5, %v2539_v0 }
 0x35d   :  { %v2574_v53 = vpop.f32.mrb[48].mxu0  ;;  %v1940_v45 = vadd.f32 %v4522_v34, %v4527_v6 }
 0x35e   :  { %v2575_v18 = vpop.f32.mrb[49].mxu0 }
 0x35f   :  { %v2576_v22 = vadd.f32 %v2575_v18, %v2574_v53 }
 0x361   :  { %v4537_v23 = vadd.f32 %v2576_v22, %v1865_v13  ;;  %v2577_v27 = vpop.f32.mrb[50].mxu0  ;;  %v1910_v13 = vadd.f32 %v4488_v55, %v4527_v6 }
 0x362   :  { %v2578_v25 = vpop.f32.mrb[51].mxu0 }
 0x363   :  { %v2579_v38 = vadd.f32 %v2578_v25, %v2577_v27 }
 0x365   :  { %v4542_v39 = vadd.f32 %v2579_v38, %v1870_v11  ;;  %v2580_v47 = vpop.f32.mrb[52].mxu0  ;;  %v1915_v11 = vadd.f32 %v4491_v7, %v4527_v6 }
 0x366   :  { %v2581_v36 = vpop.f32.mrb[53].mxu0 }
 0x367   :  { %v2582_v28 = vadd.f32 %v2581_v36, %v2580_v47 }
 0x369   :  { %v4552_v10 = vadd.f32 %v2582_v28, %v1875_v20  ;;  %v2583_v17 = vpop.f32.mrb[54].mxu0  ;;  %v1925_v28 = vadd.f32 %v4508_v63, %v4527_v6 }
 0x36a   :  { %v2584_v24 = vpop.f32.mrb[55].mxu0 }
 0x36b   :  { %v2585_v29 = vadd.f32 %v2584_v24, %v2583_v17 }
 0x36d   :  { %v4570_v19 = vadd.f32 %v2585_v29, %v1880_v26  ;;  %v2586_v57 = vpop.f32.mrb[56].mxu0  ;;  %v1930_v29 = vadd.f32 %v4511_v51, %v4527_v6 }
 0x36e   :  { %v2587_v44 = vpop.f32.mrb[57].mxu0 }
 0x36f   :  { %v2588_v46 = vadd.f32 %v2587_v44, %v2586_v57 }
 0x371   :  { %v4575_v61 = vadd.f32 %v2588_v46, %v1885_v8  ;;  %v2589_v48 = vpop.f32.mrb[58].mxu0 }
 0x372   :  { %v2590_v49 = vpop.f32.mrb[59].mxu0 }
 0x373   :  { %v2591_v50 = vadd.f32 %v2590_v49, %v2589_v48 }
 0x375   :  { %v4579_v1 = vadd.f32 %v2591_v50, %v1890_v42  ;;  %v2592_v16 = vpop.f32.mrb[60].mxu0 }
 0x376   :  { %v2593_v54 = vpop.f32.mrb[61].mxu0 }
 0x377   :  { %v2594_v33 = vadd.f32 %v2593_v54, %v2592_v16 }
 0x379   :  { %v4583_v30 = vadd.f32 %v2594_v33, %v1895_v60  ;;  %v2595_v32 = vpop.f32.mrb[62].mxu0 }
 0x37a   :  { %v2596_v62 = vpop.f32.mrb[63].mxu0 }
 0x37b   :  { %v2597_v0 = vadd.f32 %v2596_v62, %v2595_v32 }
 0x37d   :  { %v4587_v5 = vadd.f32 %v2597_v0, %v1900_v2  ;;  %v2598_v41 = vpop.f32.mrb[64].mxu0 }
 0x37e   :  { %v2599_v53 = vpop.f32.mrb[65].mxu0 }
 0x37f   :  { %v2600_v12 = vadd.f32 %v2599_v53, %v2598_v41 }
 0x381   :  { %v4591_v18 = vadd.f32 %v2600_v12, %v1905_v59  ;;  %v2601_v56 = vpop.f32.mrb[66].mxu0 }
 0x382   :  { %v2602_v3 = vpop.f32.mrb[67].mxu0 }
 0x383   :  { %v2603_v22 = vadd.f32 %v2602_v3, %v2601_v56 }
 0x385   :  { %v4595_v27 = vadd.f32 %v2603_v22, %v1910_v13  ;;  %v2604_v9 = vpop.f32.mrb[68].mxu0 }
 0x386   :  { %v2605_v25 = vpop.f32.mrb[69].mxu0 }
 0x387   :  { %v2606_v38 = vadd.f32 %v2605_v25, %v2604_v9 }
 0x389   :  { %v4599_v47 = vadd.f32 %v2606_v38, %v1915_v11  ;;  %v2607_v40 = vpop.f32.mrb[70].mxu0 }
 0x38a   :  { %v2608_v52 = vpop.f32.mrb[71].mxu0 }
 0x38b   :  { %v2609_v36 = vadd.f32 %v2608_v52, %v2607_v40 }
 0x38d   :  { %v4603_v43 = vadd.f32 %v2609_v36, %v1920_v15  ;;  %v2610_v55 = vpop.f32.mrb[72].mxu0 }
 0x38e   :  { %v2611_v20 = vpop.f32.mrb[73].mxu0 }
 0x38f   :  { %v2612_v17 = vadd.f32 %v2611_v20, %v2610_v55 }
 0x391   :  { %v4607_v24 = vadd.f32 %v2612_v17, %v1925_v28  ;;  %v2613_v7 = vpop.f32.mrb[74].mxu0 }
 0x392   :  { %v2614_v26 = vpop.f32.mrb[75].mxu0 }
 0x393   :  { %v2615_v31 = vadd.f32 %v2614_v26, %v2613_v7 }
 0x395   :  { %v4611_v21 = vadd.f32 %v2615_v31, %v1930_v29  ;;  %v2616_v14 = vpop.f32.mrb[76].mxu0 }
 0x396   :  { %v2617_v58 = vpop.f32.mrb[77].mxu0 }
 0x397   :  { %v2618_v37 = vadd.f32 %v2617_v58, %v2616_v14 }
 0x399   :  { %v4615_v57 = vadd.f32 %v2618_v37, %v1935_v35  ;;  %v2619_v63 = vpop.f32.mrb[78].mxu0 }
 0x39a   :  { %v2620_v44 = vpop.f32.mrb[79].mxu0 }
 0x39b   :  { %v2621_v8 = vadd.f32 %v2620_v44, %v2619_v63 }
 0x39d   :  { %v4619_v46 = vadd.f32 %v2621_v8, %v1940_v45  ;;  %v2654_v51 = vpop.f32.mrb[80].mxu0 }
 0x39e   :  { %v2655_v48 = vpop.f32.mrb[81].mxu0 }
 0x39f   :  { %v2656_v49 = vadd.f32 %v2655_v48, %v2654_v51 }
 0x3a1   :  { %v2155_v42 = vadd.f32 %v2656_v49, %v4537_v23  ;;  %v2657_v50 = vpop.f32.mrb[82].mxu0 }
 0x3a2   :  { %v2658_v16 = vpop.f32.mrb[83].mxu0 }
 0x3a3   :  { %v2659_v54 = vadd.f32 %v2658_v16, %v2657_v50  ;;  %v2233_v32 = vmax.f32 %v2155_v42, 0.0 }
 0x3a5   :  { %v2160_v4 = vadd.f32 %v2659_v54, %v4542_v39  ;;  %v2660_v60 = vpop.f32.mrb[84].mxu0 }
 0x3a6   :  { %v2661_v33 = vpop.f32.mrb[85].mxu0 }
 0x3a7   :  { %v2234_v62 = vmax.f32 %v2160_v4, 0.0  ;;  %v2662_v2 = vadd.f32 %v2661_v33, %v2660_v60 }
 0x3a9   :  { %v2249_v0 = vadd.f32 %v2234_v62, %v2233_v32  ;;  %v2165_v34 = vadd.f32 %v2662_v2, %v4552_v10  ;;  %v2663_v6 = vpop.f32.mrb[86].mxu0 }
 0x3aa   :  { %v2664_v41 = vpop.f32.mrb[87].mxu0 }
 0x3ab   :  { %v2250_v53 = vrot.slane %v2249_v0, 4  ;;  %v2665_v59 = vadd.f32 %v2664_v41, %v2663_v6  ;;  %v2235_v13 = vmax.f32 %v2165_v34, 0.0 }
 0x3ad   :  { %v2251_v12 = vadd.f32 %v2250_v53, %v2249_v0  ;;  %v2170_v23 = vadd.f32 %v2665_v59, %v4570_v19  ;;  %v2666_v56 = vpop.f32.mrb[88].mxu0 }
 0x3ae   :  { %v2667_v3 = vpop.f32.mrb[89].mxu0 }
 0x3af   :  { %v2236_v22 = vmax.f32 %v2170_v23, 0.0  ;;  %v2668_v39 = vadd.f32 %v2667_v3, %v2666_v56  ;;  %v2252_v9 = vrot.slane %v2251_v12, 2 }
 0x3b1   :  { %v2256_v25 = vadd.f32 %v2236_v22, %v2235_v13  ;;  %v2175_v11 = vadd.f32 %v2668_v39, %v4575_v61  ;;  %v2669_v38 = vpop.f32.mrb[90].mxu0  ;;  %v2253_v15 = vadd.f32 %v2252_v9, %v2251_v12 }
 0x3b2   :  { %v2670_v40 = vpop.f32.mrb[91].mxu0 }
 0x3b3   :  { %v2257_v52 = vrot.slane %v2256_v25, 4  ;;  %v2671_v10 = vadd.f32 %v2670_v40, %v2669_v38  ;;  %v2237_v17 = vmax.f32 %v2175_v11, 0.0  ;;  %v2254_v29 = vrot.slane %v2253_v15, 1 }
 0x3b5   :  { %v2258_v36 = vadd.f32 %v2257_v52, %v2256_v25  ;;  %v2180_v55 = vadd.f32 %v2671_v10, %v4579_v1  ;;  %v2672_v20 = vpop.f32.mrb[92].mxu0  ;;  %v2255_v45 = vadd.f32 %v2254_v29, %v2253_v15 }
 0x3b6   :  { %v2673_v28 = vpop.f32.mrb[93].mxu0 }
 0x3b7   :  { %v2259_v19 = vrot.slane %v2258_v36, 2  ;;  %v2238_v7 = vmax.f32 %v2180_v55, 0.0  ;;  %v2674_v26 = vadd.f32 %v2673_v28, %v2672_v20 }
 0x3b9   :  { %v2260_v31 = vadd.f32 %v2259_v19, %v2258_v36  ;;  %v2263_v14 = vadd.f32 %v2238_v7, %v2237_v17  ;;  %v2185_v58 = vadd.f32 %v2674_v26, %v4583_v30  ;;  %v2675_v61 = vpop.f32.mrb[94].mxu0 }
 0x3ba   :  { %v2676_v35 = vpop.f32.mrb[95].mxu0 }
 0x3bb   :  { %v2261_v37 = vrot.slane %v2260_v31, 1  ;;  %v2264_v63 = vrot.slane %v2263_v14, 4  ;;  %v2677_v44 = vadd.f32 %v2676_v35, %v2675_v61  ;;  %v2239_v49 = vmax.f32 %v2185_v58, 0.0 }
 0x3bd   :  { %v2262_v8 = vadd.f32 %v2261_v37, %v2260_v31  ;;  %v2265_v1 = vadd.f32 %v2264_v63, %v2263_v14  ;;  %v2190_v51 = vadd.f32 %v2677_v44, %v4587_v5  ;;  %v2678_v48 = vpop.f32.mrb[96].mxu0 }
 0x3be   :  { %v2679_v42 = vpop.f32.mrb[97].mxu0 }
 0x3bf   :  { %v2337_v50 = vsel %vm2336_vm6, %v2262_v8, %v2255_v45  ;;  %v2266_v16 = vrot.slane %v2265_v1, 2  ;;  %v2240_v54 = vmax.f32 %v2190_v51, 0.0  ;;  %v2680_v4 = vadd.f32 %v2679_v42, %v2678_v48 }
 0x3c1   :  { %v2267_v60 = vadd.f32 %v2266_v16, %v2265_v1  ;;  %v2270_v30 = vadd.f32 %v2240_v54, %v2239_v49  ;;  %v2195_v33 = vadd.f32 %v2680_v4, %v4591_v18  ;;  %v2681_v32 = vpop.f32.mrb[98].mxu0 }
 0x3c2   :  { %v2682_v62 = vpop.f32.mrb[99].mxu0 }
 0x3c3   :  { %v2268_v2 = vrot.slane %v2267_v60, 1  ;;  %v2271_v0 = vrot.slane %v2270_v30, 4  ;;  %v2683_v34 = vadd.f32 %v2682_v62, %v2681_v32  ;;  %v2241_v59 = vmax.f32 %v2195_v33, 0.0 }
 0x3c5   :  { %v2269_v6 = vadd.f32 %v2268_v2, %v2267_v60  ;;  %v2272_v41 = vadd.f32 %v2271_v0, %v2270_v30  ;;  %v2200_v5 = vadd.f32 %v2683_v34, %v4595_v27  ;;  %v2684_v53 = vpop.f32.mrb[100].mxu0 }
 0x3c6   :  { %v2685_v12 = vpop.f32.mrb[101].mxu0 }
 0x3c7   :  { %v2339_v23 = vsel %vm2338_vm7, %v2269_v6, %v2337_v50  ;;  %v2273_v56 = vrot.slane %v2272_v41, 2  ;;  %v2242_v3 = vmax.f32 %v2200_v5, 0.0  ;;  %v2686_v13 = vadd.f32 %v2685_v12, %v2684_v53 }
 0x3c9   :  { %v2274_v22 = vadd.f32 %v2273_v56, %v2272_v41  ;;  %v2277_v39 = vadd.f32 %v2242_v3, %v2241_v59  ;;  %v2205_v18 = vadd.f32 %v2686_v13, %v4599_v47  ;;  %v2687_v9 = vpop.f32.mrb[102].mxu0 }
 0x3ca   :  { %v2688_v25 = vpop.f32.mrb[103].mxu0 }
 0x3cb   :  { %v2275_v11 = vrot.slane %v2274_v22, 1  ;;  %v2278_v38 = vrot.slane %v2277_v39, 4  ;;  %v2689_v40 = vadd.f32 %v2688_v25, %v2687_v9  ;;  %v2243_v36 = vmax.f32 %v2205_v18, 0.0 }
 0x3cd   :  { %v2276_v52 = vadd.f32 %v2275_v11, %v2274_v22  ;;  %v2279_v10 = vadd.f32 %v2278_v38, %v2277_v39  ;;  %v2210_v27 = vadd.f32 %v2689_v40, %v4603_v43  ;;  %v2690_v15 = vpop.f32.mrb[104].mxu0 }
 0x3ce   :  { %v2691_v55 = vpop.f32.mrb[105].mxu0 }
 0x3cf   :  { %v2280_v20 = vrot.slane %v2279_v10, 2  ;;  %v2244_v28 = vmax.f32 %v2210_v27, 0.0  ;;  %v2692_v19 = vadd.f32 %v2691_v55, %v2690_v15  ;;  %v2341_v17 = vsel %vm2340_vm8, %v2276_v52, %v2339_v23 }
 0x3d1   :  { %v2281_v7 = vadd.f32 %v2280_v20, %v2279_v10  ;;  %v2284_v26 = vadd.f32 %v2244_v28, %v2243_v36  ;;  %v2215_v47 = vadd.f32 %v2692_v19, %v4607_v24  ;;  %v2693_v29 = vpop.f32.mrb[106].mxu0 }
 0x3d2   :  { %v2694_v31 = vpop.f32.mrb[107].mxu0 }
 0x3d3   :  { %v2282_v14 = vrot.slane %v2281_v7, 1  ;;  %v2285_v58 = vrot.slane %v2284_v26, 4  ;;  %v2695_v61 = vadd.f32 %v2694_v31, %v2693_v29  ;;  %v2245_v44 = vmax.f32 %v2215_v47, 0.0 }
 0x3d5   :  { %v2283_v35 = vadd.f32 %v2282_v14, %v2281_v7  ;;  %v2286_v37 = vadd.f32 %v2285_v58, %v2284_v26  ;;  %v2220_v43 = vadd.f32 %v2695_v61, %v4611_v21  ;;  %v2696_v63 = vpop.f32.mrb[108].mxu0 }
 0x3d6   :  { %v2697_v45 = vpop.f32.mrb[109].mxu0 }
 0x3d7   :  { %v2287_v8 = vrot.slane %v2286_v37, 2  ;;  %v2246_v1 = vmax.f32 %v2220_v43, 0.0  ;;  %v2698_v51 = vadd.f32 %v2697_v45, %v2696_v63  ;;  %v2343_v48 = vsel %vm2342_vm9, %v2283_v35, %v2341_v17 }
 0x3d9   :  { %v2288_v49 = vadd.f32 %v2287_v8, %v2286_v37  ;;  %v2291_v42 = vadd.f32 %v2246_v1, %v2245_v44  ;;  %v2225_v24 = vadd.f32 %v2698_v51, %v4615_v57  ;;  %v2699_v50 = vpop.f32.mrb[110].mxu0 }
 0x3da   :  { %v2700_v16 = vpop.f32.mrb[111].mxu0 }
 0x3db   :  { %v2289_v54 = vrot.slane %v2288_v49, 1  ;;  %v2292_v4 = vrot.slane %v2291_v42, 4  ;;  %v2701_v60 = vadd.f32 %v2700_v16, %v2699_v50  ;;  %v2247_v62 = vmax.f32 %v2225_v24, 0.0 }
 0x3dd   :  { %v2290_v30 = vadd.f32 %v2289_v54, %v2288_v49  ;;  %v2293_v33 = vadd.f32 %v2292_v4, %v2291_v42  ;;  %v2230_v21 = vadd.f32 %v2701_v60, %v4619_v46  ;;  %v2444_v46 = vld [vmem:[%s4651_s8] ss:$0 sm:$0xff] }
 0x3df   :  { %v2294_v32 = vrot.slane %v2293_v33, 2  ;;  %v2248_v2 = vmax.f32 %v2230_v21, 0.0  ;;  %v2345_v0 = vsel %vm2344_vm10, %v2290_v30, %v2343_v48 }
 0x3e1   :  { %v2295_v34 = vadd.f32 %v2294_v32, %v2293_v33  ;;  %v2298_v6 = vadd.f32 %v2248_v2, %v2247_v62 }
 0x3e3   :  { %v2296_v41 = vrot.slane %v2295_v34, 1  ;;  %v2299_v5 = vrot.slane %v2298_v6, 4 }
 0x3e5   :  { %v2297_v57 = vadd.f32 %v2296_v41, %v2295_v34  ;;  %v2300_v53 = vadd.f32 %v2299_v5, %v2298_v6 }
 0x3e7   :  { %v2301_v59 = vrot.slane %v2300_v53, 2  ;;  %v2347_v12 = vsel %vm2346_vm11, %v2297_v57, %v2345_v0 }
 0x3e9   :  { %v2302_v23 = vadd.f32 %v2301_v59, %v2300_v53 }
 0x3eb   :  { %v2303_v56 = vrot.slane %v2302_v23, 1 }
 0x3ed   :  { %v2304_v3 = vadd.f32 %v2303_v56, %v2302_v23 }
 0x3ef   :  { %v2349_v13 = vsel %vm2348_vm12, %v2304_v3, %v2347_v12 }
 0x3f0   :  { %2778 = vmatmul.mubr.f32.vlgmr.msra.gmra.mrb[112].mxu0 %v2349_v13 }
 0x4c3   :  { %v2417_v22 = vpop.f32.mrb[112].mxu0 }
 0x4c4   :  { %v2418_v39 = vadd.f32 %v2444_v46, %v2417_v22  ;;  %v2779_v18 = vpop.f32.mrb[113].mxu0 }
 0x4c6   :  { %2421 = vst [vmem:[%s4652_s9] sm:$0xff] %v2418_v39 }

</bundles_post_ra>
